<compile_context>
chip_gen: v7x
topology: tpu7x:2x2x1
jax: 0.10.0
libtpu: 0.0.40
codegen_flags: <defaults>
</compile_context>

<pallas_src>
import functools

import jax
import jax.numpy as jnp
from jax.experimental import pallas as pl
from jax.experimental.pallas import tpu as pltpu


def _autopad(k, p=None, d=1):
    if d > 1:
        k = d * (k - 1) + 1
    return k // 2 if p is None else p


def _round_up(x, m):
    return ((x + m - 1) // m) * m


# --------------------------------------------------------------------------
# Fast path (stride == 1): in-kernel shift-and-accumulate over k*k taps.
# --------------------------------------------------------------------------
def _conv_tap_kernel(x_ref, w_ref, b_ref, o_ref, *, k, d, th, w_out, act):
    # x_ref: (th + d*(k-1), w_pad, c1)  spatially padded NHWC input slab
    # w_ref: (k*k, c1, tc2)             conv weight with BN scale folded in
    # b_ref: (1, tc2)                   folded BN bias (f32)
    # o_ref: (th * w_out, tc2)          lane-dense output tile
    c1 = x_ref.shape[-1]
    tc2 = o_ref.shape[-1]
    x = x_ref[...]                                     # load slab once
    acc = jnp.zeros((th * w_out, tc2), jnp.float32)
    for t in range(k * k):                             # unrolled k*k MXU matmuls
        kh, kw = t // k, t % k
        xs = x[kh * d: kh * d + th, kw * d: kw * d + w_out, :]
        acc = acc + jnp.dot(xs.reshape(th * w_out, c1), w_ref[t],
                            preferred_element_type=jnp.float32)
    y = acc + b_ref[...]
    if act:
        # SiLU: y * sigmoid(y); exp on the EUP, reciprocal via pl.reciprocal
        y = y * pl.reciprocal(1.0 + jnp.exp(-y))
    o_ref[...] = y.astype(o_ref.dtype)


def _pick_row_tile(h_out, w_out, w_pad, c1, tc2, k, d, in_bytes, out_bytes,
                   budget_bytes, want_multiple_tiles):
    # Aim at ~1024 output pixels per grid step, bounded by a VMEM budget.
    th = max(1, min(h_out, max(1, 1024 // max(w_out, 1))))
    if want_multiple_tiles and th >= h_out and h_out > 1:
        th = (h_out + 1) // 2        # keep >= 2 grid steps so v7x's 2 TCs both work

    def fits(t):
        t_slab = t + d * (k - 1)
        need = (2 * t_slab * w_pad * c1 * in_bytes      # double-buffered input slab
                + 2 * t * w_out * tc2 * out_bytes       # double-buffered output
                + 2 * k * k * c1 * tc2 * in_bytes       # weight block
                + t * w_out * tc2 * 4                   # f32 accumulator
                + (1 << 20))                            # headroom
        return need <= budget_bytes

    while th > 1 and not fits(th):
        th = max(1, th // 2)
    return th


# --------------------------------------------------------------------------
# Fallback (stride > 1): fused im2col matmul + BN + SiLU (previously validated).
# --------------------------------------------------------------------------
def _im2col_kernel(p_ref, w_ref, scale_ref, bias_ref, o_ref, *, act):
    y = jnp.dot(p_ref[...], w_ref[...], preferred_element_type=jnp.float32)
    y = y * scale_ref[...] + bias_ref[...]
    if act:
        y = y * pl.reciprocal(1.0 + jnp.exp(-y))
    o_ref[...] = y.astype(o_ref.dtype)


def _conv_im2col(x_nchw, weight, scale, bias, *, k, s, p, d, act):
    n, c1, h, w = x_nchw.shape
    c2 = weight.shape[0]
    x_nhwc = jnp.transpose(x_nchw, (0, 2, 3, 1))
    xp = jnp.pad(x_nhwc, ((0, 0), (p, p), (p, p), (0, 0)))
    ho = (h + 2 * p - d * (k - 1) - 1) // s + 1
    wo = (w + 2 * p - d * (k - 1) - 1) // s + 1
    taps = []
    for kh in range(k):
        for kw in range(k):
            taps.append(xp[:, kh * d: kh * d + (ho - 1) * s + 1: s,
                              kw * d: kw * d + (wo - 1) * s + 1: s, :])
    patches = jnp.concatenate(taps, axis=-1).reshape(n * ho * wo, k * k * c1)
    w_mat = jnp.transpose(weight, (2, 3, 1, 0)).reshape(k * k * c1, c2)

    m_dim, k_dim = patches.shape
    tm = min(512, _round_up(m_dim, 8))
    m_pad = _round_up(m_dim, tm)
    if m_pad != m_dim:
        patches = jnp.pad(patches, ((0, m_pad - m_dim), (0, 0)))

    out_flat = pl.pallas_call(
        functools.partial(_im2col_kernel, act=act),
        out_shape=jax.ShapeDtypeStruct((m_pad, c2), x_nchw.dtype),
        grid_spec=pltpu.PrefetchScalarGridSpec(
            num_scalar_prefetch=0,
            grid=(m_pad // tm,),
            in_specs=[
                pl.BlockSpec((tm, k_dim), lambda i: (i, 0)),
                pl.BlockSpec((k_dim, c2), lambda i: (0, 0)),
                pl.BlockSpec((1, c2), lambda i: (0, 0)),
                pl.BlockSpec((1, c2), lambda i: (0, 0)),
            ],
            out_specs=pl.BlockSpec((tm, c2), lambda i: (i, 0)),
        ),
        compiler_params=pltpu.CompilerParams(
            dimension_semantics=("parallel",),
            vmem_limit_bytes=48 * 1024 * 1024),
    )(patches, w_mat, scale.reshape(1, c2), bias.reshape(1, c2))

    out = out_flat[:m_dim].reshape(n, ho, wo, c2)
    return jnp.transpose(out, (0, 3, 1, 2))


# --------------------------------------------------------------------------
# Public wrapper: PyTorch `Conv` forward (conv -> BN(eval) -> SiLU), NCHW I/O.
# --------------------------------------------------------------------------
@functools.partial(jax.jit, static_argnames=("k", "s", "p", "g", "d", "act",
                                             "eps", "compute_dtype"))
def conv_forward(x_nchw, weight, bn_gamma, bn_beta, bn_mean, bn_var,
                 *, k=1, s=1, p=None, g=1, d=1, act=True, eps=1e-3,
                 compute_dtype=None):
    if g != 1:
        raise NotImplementedError("grouped conv (g > 1) not supported")

    pad = _autopad(k, p, d)
    n, c1, h, w = x_nchw.shape
    c2 = weight.shape[0]

    # Fold eval-mode BatchNorm into per-output-channel scale / bias.
    scale = bn_gamma / jnp.sqrt(bn_var + eps)
    bias = bn_beta - bn_mean * scale

    if s != 1:
        return _conv_im2col(x_nchw, weight, scale, bias, k=k, s=s, p=pad, d=d, act=act)

    in_dtype = x_nchw.dtype
    cdt = in_dtype if compute_dtype is None else compute_dtype
    out_dtype = in_dtype

    h_out = h + 2 * pad - d * (k - 1)
    w_out = w + 2 * pad - d * (k - 1)
    w_pad_dim = w + 2 * pad

    # Lane-dense output channels.
    c2p = _round_up(c2, 128)
    tc2 = 256 if c2p % 256 == 0 else 128
    n_c2 = c2p // tc2

    in_bytes = jnp.dtype(cdt).itemsize
    out_bytes = jnp.dtype(out_dtype).itemsize
    budget = 28 * 1024 * 1024          # fits v7x (64 MiB VMEM) and v5e/v6e
    th = _pick_row_tile(h_out, w_out, w_pad_dim, c1, tc2, k, d,
                        in_bytes, out_bytes, budget,
                        want_multiple_tiles=(n * n_c2 == 1))
    num_rb = -(-h_out // th)
    th_slab = th + d * (k - 1)

    # Glue: NCHW -> NHWC, spatial zero-pad (+ bottom pad so every row block is full).
    x_nhwc = jnp.transpose(x_nchw, (0, 2, 3, 1))
    extra = max(0, num_rb * th + d * (k - 1) - (h + 2 * pad))
    x_p = jnp.pad(x_nhwc, ((0, 0), (pad, pad + extra), (pad, pad), (0, 0)))

    # Overlapping row slabs: (n, num_rb, th_slab, w_pad, c1).
    row_idx = (jnp.arange(num_rb) * th)[:, None] + jnp.arange(th_slab)[None, :]
    slabs = x_p[:, row_idx].astype(cdt)

    # Weight (c2, c1, kh, kw) -> (k*k, c1, c2), BN scale folded, padded to c2p.
    w_mat = jnp.transpose(weight, (2, 3, 1, 0)).reshape(k * k, c1, c2)
    w_mat = (w_mat * scale[None, None, :]).astype(cdt)
    w_mat = jnp.pad(w_mat, ((0, 0), (0, 0), (0, c2p - c2)))
    b_vec = jnp.pad(bias.astype(jnp.float32), (0, c2p - c2)).reshape(1, c2p)

    m_total = n * num_rb * th * w_out
    cost = pl.CostEstimate(
        flops=2 * m_total * k * k * c1 * c2p,
        transcendentals=(m_total * c2p) if act else 0,
        bytes_accessed=int(slabs.size) * in_bytes + int(w_mat.size) * in_bytes
                       + m_total * c2p * out_bytes)

    kernel = functools.partial(_conv_tap_kernel, k=k, d=d, th=th, w_out=w_out,
                               act=bool(act))

    out = pl.pallas_call(
        kernel,
        out_shape=jax.ShapeDtypeStruct((n, num_rb, th * w_out, c2p), out_dtype),
        grid_spec=pltpu.PrefetchScalarGridSpec(
            num_scalar_prefetch=0,
            grid=(n, num_rb, n_c2),
            in_specs=[
                pl.BlockSpec((None, None, th_slab, w_pad_dim, c1),
                             lambda ni, ri, ci: (ni, ri, 0, 0, 0)),
                pl.BlockSpec((k * k, c1, tc2), lambda ni, ri, ci: (0, 0, ci)),
                pl.BlockSpec((1, tc2), lambda ni, ri, ci: (0, ci)),
            ],
            out_specs=pl.BlockSpec((None, None, th * w_out, tc2),
                                   lambda ni, ri, ci: (ni, ri, 0, ci)),
        ),
        compiler_params=pltpu.CompilerParams(
            dimension_semantics=("parallel", "parallel", "parallel"),
            vmem_limit_bytes=48 * 1024 * 1024),
        cost_estimate=cost,
    )(slabs, w_mat, b_vec)

    out = out.reshape(n, num_rb * th, w_out, c2p)[:, :h_out, :, :c2]
    return jnp.transpose(out, (0, 3, 1, 2))    # back to NCHW (interface contract)


# --------------------------------------------------------------------------
# Reference + self-test
# --------------------------------------------------------------------------
def _reference(x, weight, g, b, m, v, *, k, s, p, d, eps=1e-3):
    y = jax.lax.conv_general_dilated(
        x, weight, window_strides=(s, s), padding=[(p, p), (p, p)],
        rhs_dilation=(d, d), dimension_numbers=("NCHW", "OIHW", "NCHW"))
    scale = (g / jnp.sqrt(v + eps)).reshape(1, -1, 1, 1)
    bias = (b - m * g / jnp.sqrt(v + eps)).reshape(1, -1, 1, 1)
    y = y * scale + bias
    return y * jax.nn.sigmoid(y)


if __name__ == "__main__":
    key = jax.random.PRNGKey(0)
    k_x, k_w, k_w1, k_g, k_b, k_m, k_v = jax.random.split(key, 7)

    N, C1, H, W = 2, 4, 16, 16
    C2, K = 8, 3

    x = jax.random.normal(k_x, (N, C1, H, W), dtype=jnp.float32)
    w3 = jax.random.normal(k_w, (C2, C1, K, K), dtype=jnp.float32) * 0.1
    w1 = jax.random.normal(k_w1, (C2, C1, 1, 1), dtype=jnp.float32) * 0.1
    gamma = 1.0 + 0.1 * jax.random.normal(k_g, (C2,), dtype=jnp.float32)
    beta = 0.1 * jax.random.normal(k_b, (C2,), dtype=jnp.float32)
    mean = 0.05 * jax.random.normal(k_m, (C2,), dtype=jnp.float32)
    var = 1.0 + 0.1 * jnp.abs(jax.random.normal(k_v, (C2,), dtype=jnp.float32))

    # Conv(c1, c2, k=3, s=1): fast path (in-kernel tap accumulation).
    out = jax.block_until_ready(conv_forward(x, w3, gamma, beta, mean, var, k=K, s=1, d=1))
    ref = _reference(x, w3, gamma, beta, mean, var, k=K, s=1, p=K // 2, d=1)
    assert out.shape == ref.shape, (out.shape, ref.shape)
    assert jnp.allclose(out, ref, atol=1e-4, rtol=1e-4), float(jnp.max(jnp.abs(out - ref)))

    # Conv(c1, c2, k=1): module default, single-tap fast path.
    out1 = jax.block_until_ready(conv_forward(x, w1, gamma, beta, mean, var, k=1, s=1, d=1))
    ref1 = _reference(x, w1, gamma, beta, mean, var, k=1, s=1, p=0, d=1)
    assert out1.shape == ref1.shape, (out1.shape, ref1.shape)
    assert jnp.allclose(out1, ref1, atol=1e-4, rtol=1e-4), float(jnp.max(jnp.abs(out1 - ref1)))

    # Conv(c1, c2, k=3, s=2): strided config exercises the im2col fallback path.
    out2 = jax.block_until_ready(conv_forward(x, w3, gamma, beta, mean, var, k=K, s=2, d=1))
    ref2 = _reference(x, w3, gamma, beta, mean, var, k=K, s=2, p=K // 2, d=1)
    assert out2.shape == ref2.shape, (out2.shape, ref2.shape)
    assert jnp.allclose(out2, ref2, atol=1e-4, rtol=1e-4), float(jnp.max(jnp.abs(out2 - ref2)))

    print("KERNEL_OK")
</pallas_src>

<mosaic_0001>
module attributes {stable_mosaic.version = 11 : i64} {
  func.func @_conv_tap_kernel(%arg0: i32, %arg1: i32, %arg2: i32, %arg3: memref<1x1x18x18x4xf32, #tpu.memory_space<vmem>>, %arg4: memref<9x4x128xf32, #tpu.memory_space<vmem>>, %arg5: memref<1x128xf32, #tpu.memory_space<vmem>>, %arg6: memref<1x1x256x128xf32, #tpu.memory_space<vmem>>) attributes {dimension_semantics = [#tpu.dimension_semantics<parallel>, #tpu.dimension_semantics<parallel>, #tpu.dimension_semantics<parallel>], iteration_bounds = array<i64: 2, 1, 1>, scalar_prefetch = 0 : i64, scratch_operands = 0 : i64, tpu.core_type = #tpu.core_type<tc>, window_params = [{transform_indices = @transform_0, window_bounds = array<i64: 1, 1, 18, 18, 4>}, {transform_indices = @transform_1, window_bounds = array<i64: 9, 4, 128>}, {transform_indices = @transform_2, window_bounds = array<i64: 1, 128>}, {transform_indices = @transform_3, window_bounds = array<i64: 1, 1, 256, 128>}]} {
    %c0 = arith.constant 0 : index
    %c0_0 = arith.constant 0 : index
    %c0_1 = arith.constant 0 : index
    %c0_2 = arith.constant 0 : index
    %c0_3 = arith.constant 0 : index
    %0 = vector.load %arg3[%c0, %c0_0, %c0_1, %c0_2, %c0_3] : memref<1x1x18x18x4xf32, #tpu.memory_space<vmem>>, vector<1x1x18x18x4xf32>
    %1 = vector.shape_cast %0 : vector<1x1x18x18x4xf32> to vector<18x18x4xf32>
    %cst = arith.constant 0.000000e+00 : f32
    %2 = vector.broadcast %cst : f32 to vector<256x128xf32>
    %3 = vector.extract_strided_slice %1 {offsets = [0, 0, 0], sizes = [16, 16, 4], strides = [1, 1, 1]} : vector<18x18x4xf32> to vector<16x16x4xf32>
    %4 = vector.shape_cast %3 : vector<16x16x4xf32> to vector<256x4xf32>
    %c0_4 = arith.constant 0 : index
    %c0_5 = arith.constant 0 : index
    %c0_6 = arith.constant 0 : index
    %5 = vector.load %arg4[%c0_4, %c0_5, %c0_6] : memref<9x4x128xf32, #tpu.memory_space<vmem>>, vector<1x4x128xf32>
    %6 = vector.shape_cast %5 : vector<1x4x128xf32> to vector<4x128xf32>
    %cst_7 = arith.constant dense<0.000000e+00> : vector<256x128xf32>
    %7 = tpu.matmul %4, %6, %cst_7 {dimension_numbers = #tpu.dot_dimension_numbers<[1], [0], [0], [1], [0, 0, 1, 1], [], []>} : vector<256x4xf32>, vector<4x128xf32>, vector<256x128xf32> -> vector<256x128xf32>
    %8 = arith.addf %2, %7 : vector<256x128xf32>
    %9 = vector.extract_strided_slice %1 {offsets = [0, 1, 0], sizes = [16, 16, 4], strides = [1, 1, 1]} : vector<18x18x4xf32> to vector<16x16x4xf32>
    %10 = vector.shape_cast %9 : vector<16x16x4xf32> to vector<256x4xf32>
    %c1 = arith.constant 1 : index
    %c0_8 = arith.constant 0 : index
    %c0_9 = arith.constant 0 : index
    %11 = vector.load %arg4[%c1, %c0_8, %c0_9] : memref<9x4x128xf32, #tpu.memory_space<vmem>>, vector<1x4x128xf32>
    %12 = vector.shape_cast %11 : vector<1x4x128xf32> to vector<4x128xf32>
    %cst_10 = arith.constant dense<0.000000e+00> : vector<256x128xf32>
    %13 = tpu.matmul %10, %12, %cst_10 {dimension_numbers = #tpu.dot_dimension_numbers<[1], [0], [0], [1], [0, 0, 1, 1], [], []>} : vector<256x4xf32>, vector<4x128xf32>, vector<256x128xf32> -> vector<256x128xf32>
    %14 = arith.addf %8, %13 : vector<256x128xf32>
    %15 = vector.extract_strided_slice %1 {offsets = [0, 2, 0], sizes = [16, 16, 4], strides = [1, 1, 1]} : vector<18x18x4xf32> to vector<16x16x4xf32>
    %16 = vector.shape_cast %15 : vector<16x16x4xf32> to vector<256x4xf32>
    %c2 = arith.constant 2 : index
    %c0_11 = arith.constant 0 : index
    %c0_12 = arith.constant 0 : index
    %17 = vector.load %arg4[%c2, %c0_11, %c0_12] : memref<9x4x128xf32, #tpu.memory_space<vmem>>, vector<1x4x128xf32>
    %18 = vector.shape_cast %17 : vector<1x4x128xf32> to vector<4x128xf32>
    %cst_13 = arith.constant dense<0.000000e+00> : vector<256x128xf32>
    %19 = tpu.matmul %16, %18, %cst_13 {dimension_numbers = #tpu.dot_dimension_numbers<[1], [0], [0], [1], [0, 0, 1, 1], [], []>} : vector<256x4xf32>, vector<4x128xf32>, vector<256x128xf32> -> vector<256x128xf32>
    %20 = arith.addf %14, %19 : vector<256x128xf32>
    %21 = vector.extract_strided_slice %1 {offsets = [1, 0, 0], sizes = [16, 16, 4], strides = [1, 1, 1]} : vector<18x18x4xf32> to vector<16x16x4xf32>
    %22 = vector.shape_cast %21 : vector<16x16x4xf32> to vector<256x4xf32>
    %c3 = arith.constant 3 : index
    %c0_14 = arith.constant 0 : index
    %c0_15 = arith.constant 0 : index
    %23 = vector.load %arg4[%c3, %c0_14, %c0_15] : memref<9x4x128xf32, #tpu.memory_space<vmem>>, vector<1x4x128xf32>
    %24 = vector.shape_cast %23 : vector<1x4x128xf32> to vector<4x128xf32>
    %cst_16 = arith.constant dense<0.000000e+00> : vector<256x128xf32>
    %25 = tpu.matmul %22, %24, %cst_16 {dimension_numbers = #tpu.dot_dimension_numbers<[1], [0], [0], [1], [0, 0, 1, 1], [], []>} : vector<256x4xf32>, vector<4x128xf32>, vector<256x128xf32> -> vector<256x128xf32>
    %26 = arith.addf %20, %25 : vector<256x128xf32>
    %27 = vector.extract_strided_slice %1 {offsets = [1, 1, 0], sizes = [16, 16, 4], strides = [1, 1, 1]} : vector<18x18x4xf32> to vector<16x16x4xf32>
    %28 = vector.shape_cast %27 : vector<16x16x4xf32> to vector<256x4xf32>
    %c4 = arith.constant 4 : index
    %c0_17 = arith.constant 0 : index
    %c0_18 = arith.constant 0 : index
    %29 = vector.load %arg4[%c4, %c0_17, %c0_18] : memref<9x4x128xf32, #tpu.memory_space<vmem>>, vector<1x4x128xf32>
    %30 = vector.shape_cast %29 : vector<1x4x128xf32> to vector<4x128xf32>
    %cst_19 = arith.constant dense<0.000000e+00> : vector<256x128xf32>
    %31 = tpu.matmul %28, %30, %cst_19 {dimension_numbers = #tpu.dot_dimension_numbers<[1], [0], [0], [1], [0, 0, 1, 1], [], []>} : vector<256x4xf32>, vector<4x128xf32>, vector<256x128xf32> -> vector<256x128xf32>
    %32 = arith.addf %26, %31 : vector<256x128xf32>
    %33 = vector.extract_strided_slice %1 {offsets = [1, 2, 0], sizes = [16, 16, 4], strides = [1, 1, 1]} : vector<18x18x4xf32> to vector<16x16x4xf32>
    %34 = vector.shape_cast %33 : vector<16x16x4xf32> to vector<256x4xf32>
    %c5 = arith.constant 5 : index
    %c0_20 = arith.constant 0 : index
    %c0_21 = arith.constant 0 : index
    %35 = vector.load %arg4[%c5, %c0_20, %c0_21] : memref<9x4x128xf32, #tpu.memory_space<vmem>>, vector<1x4x128xf32>
    %36 = vector.shape_cast %35 : vector<1x4x128xf32> to vector<4x128xf32>
    %cst_22 = arith.constant dense<0.000000e+00> : vector<256x128xf32>
    %37 = tpu.matmul %34, %36, %cst_22 {dimension_numbers = #tpu.dot_dimension_numbers<[1], [0], [0], [1], [0, 0, 1, 1], [], []>} : vector<256x4xf32>, vector<4x128xf32>, vector<256x128xf32> -> vector<256x128xf32>
    %38 = arith.addf %32, %37 : vector<256x128xf32>
    %39 = vector.extract_strided_slice %1 {offsets = [2, 0, 0], sizes = [16, 16, 4], strides = [1, 1, 1]} : vector<18x18x4xf32> to vector<16x16x4xf32>
    %40 = vector.shape_cast %39 : vector<16x16x4xf32> to vector<256x4xf32>
    %c6 = arith.constant 6 : index
    %c0_23 = arith.constant 0 : index
    %c0_24 = arith.constant 0 : index
    %41 = vector.load %arg4[%c6, %c0_23, %c0_24] : memref<9x4x128xf32, #tpu.memory_space<vmem>>, vector<1x4x128xf32>
    %42 = vector.shape_cast %41 : vector<1x4x128xf32> to vector<4x128xf32>
    %cst_25 = arith.constant dense<0.000000e+00> : vector<256x128xf32>
    %43 = tpu.matmul %40, %42, %cst_25 {dimension_numbers = #tpu.dot_dimension_numbers<[1], [0], [0], [1], [0, 0, 1, 1], [], []>} : vector<256x4xf32>, vector<4x128xf32>, vector<256x128xf32> -> vector<256x128xf32>
    %44 = arith.addf %38, %43 : vector<256x128xf32>
    %45 = vector.extract_strided_slice %1 {offsets = [2, 1, 0], sizes = [16, 16, 4], strides = [1, 1, 1]} : vector<18x18x4xf32> to vector<16x16x4xf32>
    %46 = vector.shape_cast %45 : vector<16x16x4xf32> to vector<256x4xf32>
    %c7 = arith.constant 7 : index
    %c0_26 = arith.constant 0 : index
    %c0_27 = arith.constant 0 : index
    %47 = vector.load %arg4[%c7, %c0_26, %c0_27] : memref<9x4x128xf32, #tpu.memory_space<vmem>>, vector<1x4x128xf32>
    %48 = vector.shape_cast %47 : vector<1x4x128xf32> to vector<4x128xf32>
    %cst_28 = arith.constant dense<0.000000e+00> : vector<256x128xf32>
    %49 = tpu.matmul %46, %48, %cst_28 {dimension_numbers = #tpu.dot_dimension_numbers<[1], [0], [0], [1], [0, 0, 1, 1], [], []>} : vector<256x4xf32>, vector<4x128xf32>, vector<256x128xf32> -> vector<256x128xf32>
    %50 = arith.addf %44, %49 : vector<256x128xf32>
    %51 = vector.extract_strided_slice %1 {offsets = [2, 2, 0], sizes = [16, 16, 4], strides = [1, 1, 1]} : vector<18x18x4xf32> to vector<16x16x4xf32>
    %52 = vector.shape_cast %51 : vector<16x16x4xf32> to vector<256x4xf32>
    %c8 = arith.constant 8 : index
    %c0_29 = arith.constant 0 : index
    %c0_30 = arith.constant 0 : index
    %53 = vector.load %arg4[%c8, %c0_29, %c0_30] : memref<9x4x128xf32, #tpu.memory_space<vmem>>, vector<1x4x128xf32>
    %54 = vector.shape_cast %53 : vector<1x4x128xf32> to vector<4x128xf32>
    %cst_31 = arith.constant dense<0.000000e+00> : vector<256x128xf32>
    %55 = tpu.matmul %52, %54, %cst_31 {dimension_numbers = #tpu.dot_dimension_numbers<[1], [0], [0], [1], [0, 0, 1, 1], [], []>} : vector<256x4xf32>, vector<4x128xf32>, vector<256x128xf32> -> vector<256x128xf32>
    %56 = arith.addf %50, %55 : vector<256x128xf32>
    %c0_32 = arith.constant 0 : index
    %c0_33 = arith.constant 0 : index
    %57 = vector.load %arg5[%c0_32, %c0_33] : memref<1x128xf32, #tpu.memory_space<vmem>>, vector<1x128xf32>
    %58 = vector.broadcast %57 : vector<1x128xf32> to vector<256x128xf32>
    %59 = arith.addf %56, %58 : vector<256x128xf32>
    %cst_34 = arith.constant 0.000000e+00 : f32
    %60 = vector.broadcast %cst_34 : f32 to vector<256x128xf32>
    %61 = arith.subf %60, %59 : vector<256x128xf32>
    %62 = math.exp %61 : vector<256x128xf32>
    %cst_35 = arith.constant 1.000000e+00 : f32
    %63 = vector.broadcast %cst_35 : f32 to vector<256x128xf32>
    %64 = arith.addf %63, %62 : vector<256x128xf32>
    %65 = tpu.reciprocal %64 : vector<256x128xf32> -> vector<256x128xf32>
    %66 = arith.mulf %59, %65 : vector<256x128xf32>
    %c0_36 = arith.constant 0 : index
    %c0_37 = arith.constant 0 : index
    %c0_38 = arith.constant 0 : index
    %c0_39 = arith.constant 0 : index
    %67 = vector.load %arg6[%c0_36, %c0_37, %c0_38, %c0_39] : memref<1x1x256x128xf32, #tpu.memory_space<vmem>>, vector<1x1x256x128xf32>
    %68 = vector.shape_cast %67 : vector<1x1x256x128xf32> to vector<256x128xf32>
    %69 = vector.shape_cast %66 : vector<256x128xf32> to vector<1x1x256x128xf32>
    tpu.vector_store %arg6[%c0_36, %c0_37, %c0_38, %c0_39], %69 {strides = array<i32>} : memref<1x1x256x128xf32, #tpu.memory_space<vmem>>, vector<1x1x256x128xf32>,
    return
  }
  func.func @transform_0(%arg0: i32, %arg1: i32, %arg2: i32) -> (i32, i32, i32, i32, i32) {
    %c0_i32 = arith.constant 0 : i32
    %c0_i32_0 = arith.constant 0 : i32
    %c0_i32_1 = arith.constant 0 : i32
    %c0_i32_2 = arith.constant 0 : i32
    return %arg0, %arg1, %c0_i32, %c0_i32_0, %c0_i32_1 : i32, i32, i32, i32, i32
  }
  func.func @transform_1(%arg0: i32, %arg1: i32, %arg2: i32) -> (i32, i32, i32) {
    %c0_i32 = arith.constant 0 : i32
    %c0_i32_0 = arith.constant 0 : i32
    %c0_i32_1 = arith.constant 0 : i32
    return %c0_i32, %c0_i32_0, %arg2 : i32, i32, i32
  }
  func.func @transform_2(%arg0: i32, %arg1: i32, %arg2: i32) -> (i32, i32) {
    %c0_i32 = arith.constant 0 : i32
    %c0_i32_0 = arith.constant 0 : i32
    return %c0_i32, %arg2 : i32, i32
  }
  func.func @transform_3(%arg0: i32, %arg1: i32, %arg2: i32) -> (i32, i32, i32, i32) {
    %c0_i32 = arith.constant 0 : i32
    %c0_i32_0 = arith.constant 0 : i32
    return %arg0, %arg1, %c0_i32, %arg2 : i32, i32, i32, i32
  }
}

</mosaic_0001>

<bundles_post_ra>
// kernel: conv_forward.1
= control target key start
LH: loop header
LB: loop body
LE: loop exit
PB: predicated region body
PF: predicated region fallthrough
CT: control target
= control target key end

     0   :  { %s4971_s12 = smov 0   ;;  %s4973_s13 = smov 0   ;;  %s6330_s0 = inlined_call_operand.vmem [shape: f32[2,1,18,18,4], index: 0, kind: input, shape index: {}]   ;;  %s6331_s1 = inlined_call_operand.vmem [shape: f32[9,4,128], index: 1, kind: input, shape index: {}]   ;;  %s6332_s2 = inlined_call_operand.vmem [shape: f32[1,128], index: 2, kind: input, shape index: {}]   ;;  %s6333_s3 = inlined_call_operand.vmem [shape: f32[2,1,256,128], index: 3, kind: output, shape index: {}]  }
   0x1   :  { %s4975_s14 = smov 0  }
   0x2 LB: > { %s32_s15 = sadd.s32 1, %s4945_s13  ;;  %p3456_p0 = scmp.ge.s32.totalorder %s4949_s14, 1  ;;  %s4949_s14 = sphi %s4975_s14, %s13_s14   ;;  %s4945_s13 = sphi %s4973_s13, %s6509_s13   ;;  %s4941_s12 = sphi %s4971_s12, %s6508_s12  }
   0x3   : > { %p34_p1 = scmp.ge.s32.totalorder %s32_s15, 2  ;;  %p183_p2 = scmp.lt.s32.totalorder %s4949_s14, 3 }
   0x5   : > { %s6511_s15 = smov (%p34_p1, %s32_s15), 0  ;;  %p184_p3 = pnand %p3456_p0, %p183_p2 }
   0x7   : > { %187 = sbr.rel (%p184_p3) target bundleno = 563 (0x233), region = 32 }
   0xe   : > { %v3460_v0 = vld [vmem:[%s6331_s1 + $0x4] sm:$0xf]  ;;  %vm504_vm0 = vcmask 1043456   ;;  %v4995_v1 = vld [vmem:[%s6331_s1 + $0x10] sm:$0xf]  ;;  %p225_p4 = scmp.lt.s32.totalorder %s4941_s12, 1 }
   0xf   : > { %4066 = vmatprep.subr.msk.mxu1 %vm504_vm0, %v3460_v0  ;;  %4266 = vmatprep.subr.msk.mxu0 %vm504_vm0, %v4995_v1  ;;  %v307_v2 = vld [vmem:[%s6331_s1] sm:$0xf]  ;;  %v3629_v3 = vld [vmem:[%s6331_s1 + $0x14] sm:$0xf]  ;;  %vm356_vm1 = vcmask 1046528   ;;  %vm439_vm2 = vcmask 31744  }
  0x10   : > { %4067 = vmatpush3.msk.msra.mxu1 %vm504_vm0, %v3460_v0  ;;  %4267 = vmatpush3.msk.msra.mxu0 %vm504_vm0, %v4995_v1  ;;  %s6513_s12 = smov (!%p225_p4, %s4941_s12), 1  ;;  %v5082_v33 = vld [vmem:[%s6331_s1 + $0x18] sm:$0xf]  ;;  %v5092_v35 = vld [vmem:[%s6331_s1 + $0x8] sm:$0xf]  ;;  %vm1025_vm3 = vcmask 1045504  }
  0x11   : > { %4116 = vmatprep.subr.msk.mxu1 %vm504_vm0, %v307_v2  ;;  %4316 = vmatprep.subr.msk.mxu0 %vm504_vm0, %v3629_v3  ;;  %s4774_s24 = smul.u32 432, %s6513_s12  ;;  %s3768_s17 = sshll.u32 %s6513_s12, 8 }
  0x12   : > { %s6186_s19 = scalar_lea.vmem %s6333_s3, %s3768_s17 }
  0x13   : > { %s5017_s27 = scalar_lea.vmem %s6330_s0, %s4774_s24 }
  0x14   : > { %v5020_v4 = vld [vmem:[%s5017_s27] sm:$0xff]  ;;  %v5023_v5 = vld [vmem:[%s5017_s27 + $0x8] sm:$0xff]  ;;  %v5026_v6 = vld [vmem:[%s5017_s27 + $0x18] sm:$0xff] }
  0x15   : > { %6407 = vst [vmem:[#allocation2_spill] sm:$0xff] %v5026_v6  ;;  %v357_v7 = vrot.slane %v5020_v4, 1  ;;  %v358_v8 = vrot.slane %v5023_v5, 1  ;;  %v5031_v9 = vld [vmem:[%s5017_s27 + $0x20] sm:$0xff]  ;;  %v362_v10 = vrot.slane %v5026_v6, 1  ;;  %v5043_v15 = vld [vmem:[%s5017_s27 + $0x30] sm:$0xff] }
  0x16   : > { %6408 = vst [vmem:[#allocation3_spill] sm:$0xff] %v5031_v9  ;;  %v5035_v11 = vld [vmem:[%s5017_s27 + $0x10] sm:$0x3]  ;;  %v363_v12 = vrot.slane %v5031_v9, 1  ;;  %v5040_v14 = vld [vmem:[%s5017_s27 + $0x28] sm:$0x3] }
  0x17   : > { %v360_v13 = vrot.slane %v5035_v11, 1  ;;  %v359_v16 = vsel %vm356_vm1, %v357_v7, %v358_v8  ;;  %v365_v17 = vrot.slane %v5040_v14, 1  ;;  %v5048_v18 = vld [vmem:[%s5017_s27 + $0x38] sm:$0xff]  ;;  %v367_v19 = vrot.slane %v5043_v15, 1  ;;  %v5052_v20 = vld [vmem:[%s5017_s27 + $0x40] sm:$0x3] }
  0x18   : > { %4068 = vmatprep.mubr.msk.f32.mxu1 %vm439_vm2, %v359_v16  ;;  %v364_v21 = vsel %vm356_vm1, %v362_v10, %v363_v12  ;;  %v368_v23 = vrot.slane %v5048_v18, 1  ;;  %v370_v24 = vrot.slane %v5052_v20, 1  ;;  %v5060_v25 = vld [vmem:[%s5017_s27 + $0x48] sm:$0xff]  ;;  %v5063_v26 = vld [vmem:[%s5017_s27 + $0x50] sm:$0xff]  ;;  %v5066_v27 = vld [vmem:[%s5017_s27 + $0x58] sm:$0x3] }
  0x19   : > { %v361_v22 = vsel %vm356_vm1, %v358_v8, %v360_v13  ;;  %4268 = vmatprep.mubr.msk.f32.mxu0 %vm439_vm2, %v364_v21  ;;  %v366_v28 = vsel %vm356_vm1, %v363_v12, %v365_v17  ;;  %v372_v29 = vrot.slane %v5060_v25, 1  ;;  %v373_v30 = vrot.slane %v5063_v26, 1  ;;  %v5074_v31 = vld [vmem:[%s5017_s27 + $0x60] sm:$0xff]  ;;  %v5077_v32 = vld [vmem:[%s5017_s27 + $0x68] sm:$0xff]  ;;  %v5108_v41 = vld [vmem:[%s5017_s27 + $0x70] sm:$0x3] }
  0x1a   : > { %4069 = vmatmul.mubr.msk.f32.vlgmr.msra.gmra.mrb[0].mxu1 %vm439_vm2, %v361_v22  ;;  %4269 = vmatmul.mubr.msk.f32.vlgmr.msra.gmra.mrb[0].mxu0 %vm439_vm2, %v366_v28  ;;  %v5087_v34 = vsel %vm356_vm1, %v367_v19, %v368_v23  ;;  %v5097_v36 = vsel %vm356_vm1, %v368_v23, %v370_v24  ;;  %v375_v37 = vrot.slane %v5066_v27, 1  ;;  %v377_v39 = vrot.slane %v5074_v31, 1  ;;  %v5114_v42 = vld [vmem:[%s5017_s27 + $0x78] sm:$0xff]  ;;  %v5117_v43 = vld [vmem:[%s5017_s27 + $0x80] sm:$0xff]  ;;  %v5137_v49 = vld [vmem:[%s5017_s27 + $0x88] sm:$0x3] }
  0x1b   : > { %4117 = vmatpush3.msk.msra.mxu1 %vm504_vm0, %v307_v2  ;;  %6409 = vst [vmem:[#allocation4_spill] sm:$0xff] %v5087_v34  ;;  %4317 = vmatpush3.msk.msra.mxu0 %vm504_vm0, %v3629_v3  ;;  %6410 = vst [vmem:[#allocation5_spill] sm:$0xff] %v5097_v36  ;;  %v5103_v38 = vsel %vm356_vm1, %v372_v29, %v373_v30  ;;  %v378_v40 = vrot.slane %v5077_v32, 1  ;;  %v380_v45 = vrot.slane %v5108_v41, 1  ;;  %v382_v47 = vrot.slane %v5114_v42, 1  ;;  %v5142_v50 = vld [vmem:[%s5017_s27 + $0x90] sm:$0xff] }
  0x1c   : > { %4071 = vmatprep.mubr.msk.f32.mxu1 %vm439_vm2, %v364_v21  ;;  %4271 = vmatprep.mubr.msk.f32.mxu0 %vm439_vm2, %v5087_v34  ;;  %6411 = vst [vmem:[#allocation6_spill] sm:$0xff] %v5103_v38  ;;  %v5128_v44 = vsel %vm356_vm1, %v373_v30, %v375_v37  ;;  %v383_v48 = vrot.slane %v5117_v43, 1  ;;  %v5145_v51 = vld [vmem:[%s5017_s27 + $0x98] sm:$0xff]  ;;  %v385_v53 = vrot.slane %v5137_v49, 1  ;;  %v387_v55 = vrot.slane %v5142_v50, 1  ;;  %v5168_v58 = vld [vmem:[%s5017_s27 + $0xa8] sm:$0xff] }
  0x1d   : > { %4366 = vmatprep.subr.msk.mxu0 %vm504_vm0, %v5082_v33  ;;  %4166 = vmatprep.subr.msk.mxu1 %vm504_vm0, %v5092_v35  ;;  %6412 = vst [vmem:[#allocation7_spill] sm:$0xff] %v5128_v44  ;;  %v5132_v46 = vsel %vm356_vm1, %v377_v39, %v378_v40  ;;  %v5154_v52 = vsel %vm356_vm1, %v378_v40, %v380_v45  ;;  %v388_v56 = vrot.slane %v5145_v51, 1  ;;  %v5163_v57 = vld [vmem:[%s5017_s27 + $0xa0] sm:$0x3]  ;;  %v5171_v59 = vld [vmem:[%s5017_s27 + $0xb0] sm:$0xff]  ;;  %v392_v63 = vrot.slane %v5168_v58, 1 }
  0x1e   : > { %4072 = vmatmul.mubr.msk.f32.gmra.mrb[2].mxu1 %vm439_vm2, %v366_v28  ;;  %4272 = vmatmul.mubr.msk.f32.gmra.mrb[2].mxu0 %vm439_vm2, %v5097_v36  ;;  %6413 = vst [vmem:[#allocation8_spill] sm:$0xff] %v5132_v46  ;;  %6414 = vst [vmem:[#allocation9_spill] sm:$0xff] %v5154_v52  ;;  %v5158_v54 = vsel %vm356_vm1, %v382_v47, %v383_v48  ;;  %v5180_v60 = vsel %vm356_vm1, %v383_v48, %v385_v53  ;;  %v390_v61 = vrot.slane %v5163_v57, 1  ;;  %v5189_v2 = vld [vmem:[%s5017_s27 + $0xb8] sm:$0x3]  ;;  %v5194_v3 = vld [vmem:[%s5017_s27 + $0xc0] sm:$0xff] }
  0x1f   : > { %4074 = vmatprep.mubr.msk.f32.mxu1 %vm439_vm2, %v5087_v34  ;;  %4274 = vmatprep.mubr.msk.f32.mxu0 %vm439_vm2, %v5103_v38  ;;  %6415 = vst [vmem:[#allocation10_spill] sm:$0xff] %v5158_v54  ;;  %6416 = vst [vmem:[#allocation11_spill] sm:$0xff] %v5180_v60  ;;  %v5184_v62 = vsel %vm356_vm1, %v387_v55, %v388_v56  ;;  %v393_v0 = vrot.slane %v5171_v59, 1  ;;  %v5197_v7 = vld [vmem:[%s5017_s27 + $0xc8] sm:$0xff]  ;;  %v395_v10 = vrot.slane %v5189_v2, 1  ;;  %v397_v13 = vrot.slane %v5194_v3, 1 }
  0x20   : > { %6417 = vst [vmem:[#allocation12_spill] sm:$0xff] %v5184_v62  ;;  %v5206_v8 = vsel %vm356_vm1, %v388_v56, %v390_v61  ;;  %v398_v16 = vrot.slane %v5197_v7, 1  ;;  %v5215_v17 = vld [vmem:[%s5017_s27 + $0xd0] sm:$0x3]  ;;  %v1031_v23 = vrot.slane %v5026_v6, 2  ;;  %v1032_v24 = vrot.slane %v5031_v9, 2 }
  0x21   : > { %6418 = vst [vmem:[#allocation13_spill] sm:$0xff] %v5206_v8  ;;  %v5210_v12 = vsel %vm356_vm1, %v392_v63, %v393_v0  ;;  %v5226_v19 = vsel %vm356_vm1, %v393_v0, %v395_v10  ;;  %v400_v21 = vrot.slane %v5215_v17, 1  ;;  %v5235_v28 = vld [vmem:[%s5017_s27 + $0xd8] sm:$0xff]  ;;  %v5238_v29 = vld [vmem:[%s5017_s27 + $0xe0] sm:$0xff]  ;;  %v1034_v30 = vrot.slane %v5040_v14, 2  ;;  %v5263_v53 = vld [vmem:[%s5017_s27 + $0xf0] sm:$0xff] }
  0x22   : > { %4075 = vmatmul.mubr.msk.f32.gmra.mrb[4].mxu1 %vm439_vm2, %v5097_v36  ;;  %4275 = vmatmul.mubr.msk.f32.gmra.mrb[4].mxu0 %vm439_vm2, %v5128_v44  ;;  %6419 = vst [vmem:[#allocation14_spill] sm:$0xff] %v5210_v12  ;;  %6420 = vst [vmem:[#allocation15_spill] sm:$0xff] %v5226_v19  ;;  %v5230_v22 = vsel %vm356_vm1, %v397_v13, %v398_v16  ;;  %v402_v39 = vrot.slane %v5235_v28, 1  ;;  %v403_v40 = vrot.slane %v5238_v29, 1  ;;  %v5255_v45 = vld [vmem:[%s5017_s27 + $0xe8] sm:$0x3] }
  0x23   : > { %4077 = vmatprep.mubr.msk.f32.mxu1 %vm439_vm2, %v5103_v38  ;;  %4277 = vmatprep.mubr.msk.f32.mxu0 %vm439_vm2, %v5132_v46  ;;  %6421 = vst [vmem:[#allocation16_spill] sm:$0xff] %v5230_v22  ;;  %v5250_v37 = vsel %vm356_vm1, %v398_v16, %v400_v21  ;;  %v5258_v47 = vsel %vm1025_vm3, %v1031_v23, %v1032_v24  ;;  %v1036_v48 = vrot.slane %v5043_v15, 2  ;;  %v1037_v14 = vrot.slane %v5048_v18, 2  ;;  %v5266_v55 = vld [vmem:[%s5017_s27 + $0xf8] sm:$0xff]  ;;  %v5287_v16 = vld [vmem:[%s5017_s27 + $0x100] sm:$0x3] }
  0x24   : > { %6422 = vst [vmem:[#allocation17_spill] sm:$0xff] %v5250_v37  ;;  %v405_v56 = vrot.slane %v5255_v45, 1  ;;  %v1039_v61 = vrot.slane %v5052_v20, 2  ;;  %v5279_v63 = vsel %vm1025_vm3, %v1032_v24, %v1034_v30  ;;  %v5282_v0 = vsel %vm356_vm1, %v402_v39, %v403_v40  ;;  %v5298_v24 = vld [vmem:[%s5017_s27 + $0x110] sm:$0xff]  ;;  %v5305_v30 = vld [vmem:[%s6331_s1 + $0x1c] sm:$0xf] }
  0x25   : > { %6423 = vst [vmem:[#allocation18_spill] sm:$0xff] %v5282_v0  ;;  %v407_v10 = vrot.slane %v5263_v53, 1  ;;  %v408_v13 = vrot.slane %v5266_v55, 1  ;;  %v5290_v21 = vsel %vm1025_vm3, %v1036_v48, %v1037_v14  ;;  %v1041_v20 = vrot.slane %v5060_v25, 2  ;;  %v5401_v36 = vld [vmem:[%s5017_s27 + $0x148] sm:$0x3] }
  0x26   : > { %4078 = vmatmul.mubr.msk.f32.gmra.mrb[6].mxu1 %vm439_vm2, %v5128_v44  ;;  %4278 = vmatmul.mubr.msk.f32.gmra.mrb[6].mxu0 %vm439_vm2, %v5154_v52  ;;  %v1042_v23 = vrot.slane %v5063_v26, 2  ;;  %v5312_v39 = vsel %vm356_vm1, %v403_v40, %v405_v56  ;;  %v5315_v48 = vsel %vm1025_vm3, %v1037_v14, %v1039_v61  ;;  %v413_v40 = vrot.slane %v5298_v24, 1  ;;  %v5329_v56 = vld [vmem:[%s5017_s27 + $0x118] sm:$0x3] }
  0x27   : > { %4080 = vmatprep.mubr.msk.f32.mxu1 %vm439_vm2, %v5132_v46  ;;  %4280 = vmatprep.mubr.msk.f32.mxu0 %vm439_vm2, %v5158_v54  ;;  %6424 = vst [vmem:[#allocation19_spill] sm:$0xff] %v5312_v39  ;;  %6425 = vst [vmem:[#allocation20_spill] sm:$0xff] %v5315_v48  ;;  %v1046_v61 = vrot.slane %v5074_v31, 2  ;;  %v5374_v46 = vld [vmem:[%s5017_s27 + $0x138] sm:$0xff]  ;;  %v1054_v44 = vrot.slane %v5137_v49, 2  ;;  %v1059_v34 = vrot.slane %v5163_v57, 2 }
  0x28   : > { %v5332_v14 = vsel %vm1025_vm3, %v1041_v20, %v1042_v23  ;;  %v415_v20 = vrot.slane %v5329_v56, 1  ;;  %v422_v38 = vrot.slane %v5374_v46, 1  ;;  %v1061_v57 = vrot.slane %v5168_v58, 2 }
  0x29   : > { %6427 = vst [vmem:[#allocation22_spill] sm:$0xff] %v5332_v14 }
  0x2a   : > { %4081 = vmatmul.mubr.msk.f32.gmra.mrb[8].mxu1 %vm439_vm2, %v5154_v52  ;;  %4281 = vmatmul.mubr.msk.f32.gmra.mrb[8].mxu0 %vm439_vm2, %v5180_v60  ;;  %v5366_v52 = vld [vmem:[%s5017_s27 + $0x130] sm:$0x3] }
  0x2b   : > { %4083 = vmatprep.mubr.msk.f32.mxu1 %vm439_vm2, %v5158_v54  ;;  %4283 = vmatprep.mubr.msk.f32.mxu0 %vm439_vm2, %v5184_v62 }
  0x2e   : > { %4084 = vmatmul.mubr.msk.f32.gmra.mrb[10].mxu1 %vm439_vm2, %v5180_v60  ;;  %4284 = vmatmul.mubr.msk.f32.gmra.mrb[10].mxu0 %vm439_vm2, %v5206_v8 }
  0x2f   : > { %4086 = vmatprep.mubr.msk.f32.mxu1 %vm439_vm2, %v5184_v62  ;;  %4286 = vmatprep.mubr.msk.f32.mxu0 %vm439_vm2, %v5210_v12  ;;  %v1049_v62 = vrot.slane %v5108_v41, 2  ;;  %v1051_v41 = vrot.slane %v5114_v42, 2 }
  0x32   : > { %4087 = vmatmul.mubr.msk.f32.gmra.mrb[12].mxu1 %vm439_vm2, %v5206_v8  ;;  %4287 = vmatmul.mubr.msk.f32.gmra.mrb[12].mxu0 %vm439_vm2, %v5226_v19  ;;  %v5337_v8 = vld [vmem:[%s5017_s27 + $0x120] sm:$0xff] }
  0x33   : > { %4089 = vmatprep.mubr.msk.f32.mxu1 %vm439_vm2, %v5210_v12  ;;  %4289 = vmatprep.mubr.msk.f32.mxu0 %vm439_vm2, %v5230_v22  ;;  %v1044_v12 = vrot.slane %v5066_v27, 2  ;;  %v417_v54 = vrot.slane %v5337_v8, 1 }
  0x35   : > { %v5358_v60 = vsel %vm1025_vm3, %v1042_v23, %v1044_v12  ;;  %v5377_v12 = vld [vmem:[%s5017_s27 + $0x140] sm:$0xff] }
  0x36   : > { %4090 = vmatmul.mubr.msk.f32.gmra.mrb[14].mxu1 %vm439_vm2, %v5226_v19  ;;  %4290 = vmatmul.mubr.msk.f32.gmra.mrb[14].mxu0 %vm439_vm2, %v5250_v37  ;;  %v5323_v19 = vsel %vm356_vm1, %v407_v10, %v408_v13  ;;  %v5340_v10 = vld [vmem:[%s5017_s27 + $0x128] sm:$0xff]  ;;  %6429 = vst [vmem:[#allocation24_spill] sm:$0xff] %v5358_v60 }
  0x37   : > { %4092 = vmatprep.mubr.msk.f32.mxu1 %vm439_vm2, %v5230_v22  ;;  %4318 = vmatprep.mubr.msk.f32.mxu0 %vm439_vm2, %v5258_v47  ;;  %v5295_v22 = vld [vmem:[%s5017_s27 + $0x108] sm:$0xff]  ;;  %6426 = vst [vmem:[#allocation21_spill] sm:$0xff] %v5323_v19 }
  0x3a   : > { %4093 = vmatmul.mubr.msk.f32.gmra.mrb[16].mxu1 %vm439_vm2, %v5250_v37  ;;  %4319 = vmatmul.mubr.msk.f32.vlgmr.msra.gmra.mrb[0].mxu0 %vm439_vm2, %v5279_v63  ;;  %v410_v37 = vrot.slane %v5287_v16, 1 }
  0x3b   : > { %4095 = vmatprep.mubr.msk.f32.mxu1 %vm439_vm2, %v5282_v0  ;;  %4367 = vmatpush3.msk.msra.mxu0 %vm504_vm0, %v5082_v33  ;;  %v412_v0 = vrot.slane %v5295_v22, 1  ;;  %v1047_v33 = vrot.slane %v5077_v32, 2 }
  0x3c   : > { %4321 = vmatprep.mubr.msk.f32.mxu0 %vm439_vm2, %v5290_v21  ;;  %4416 = vmatprep.subr.msk.mxu0 %vm504_vm0, %v5305_v30  ;;  %v5351_v27 = vsel %vm356_vm1, %v408_v13, %v410_v37  ;;  %v1052_v13 = vrot.slane %v5117_v43, 2 }
  0x3d   : > { %6428 = vst [vmem:[#allocation23_spill] sm:$0xff] %v5351_v27  ;;  %v5369_v37 = vsel %vm1025_vm3, %v1046_v61, %v1047_v33  ;;  %v5389_v23 = vsel %vm1025_vm3, %v1047_v33, %v1049_v62  ;;  %v420_v61 = vrot.slane %v5366_v52, 1  ;;  %v1056_v62 = vrot.slane %v5142_v50, 2 }
  0x3e   : > { %4096 = vmatmul.mubr.msk.f32.gmra.mrb[18].mxu1 %vm439_vm2, %v5312_v39  ;;  %4322 = vmatmul.mubr.msk.f32.gmra.mrb[2].mxu0 %vm439_vm2, %v5315_v48  ;;  %v5361_v39 = vsel %vm356_vm1, %v412_v0, %v413_v40  ;;  %6431 = vst [vmem:[#allocation26_spill] sm:$0xff] %v5369_v37  ;;  %v5386_v0 = vsel %vm356_vm1, %v413_v40, %v415_v20  ;;  %6433 = vst [vmem:[#allocation28_spill] sm:$0xff] %v5389_v23  ;;  %v1057_v33 = vrot.slane %v5145_v51, 2  ;;  %v5409_v20 = vld [vmem:[%s5017_s27 + $0x150] sm:$0xff]  ;;  %v5471_v48 = vld [vmem:[%s5017_s27 + $0x178] sm:$0x3] }
  0x3f   : > { %4098 = vmatprep.mubr.msk.f32.mxu1 %vm439_vm2, %v5323_v19  ;;  %4324 = vmatprep.mubr.msk.f32.mxu0 %vm439_vm2, %v5332_v14  ;;  %6430 = vst [vmem:[#allocation25_spill] sm:$0xff] %v5361_v39  ;;  %v418_v19 = vrot.slane %v5340_v10, 1  ;;  %6432 = vst [vmem:[#allocation27_spill] sm:$0xff] %v5386_v0  ;;  %v5404_v40 = vsel %vm1025_vm3, %v1051_v41, %v1052_v13  ;;  %v425_v41 = vrot.slane %v5401_v36, 1 }
  0x40   : > { %6435 = vst [vmem:[#allocation30_spill] sm:$0xff] %v5404_v40 }
  0x41   : > { %v5421_v49 = vsel %vm356_vm1, %v418_v19, %v420_v61  ;;  %v1062_v61 = vrot.slane %v5171_v59, 2 }
  0x42   : > { %4099 = vmatmul.mubr.msk.f32.gmra.mrb[20].mxu1 %vm439_vm2, %v5351_v27  ;;  %4325 = vmatmul.mubr.msk.f32.gmra.mrb[4].mxu0 %vm439_vm2, %v5358_v60  ;;  %v5395_v27 = vsel %vm356_vm1, %v417_v54, %v418_v19  ;;  %v5412_v54 = vld [vmem:[%s5017_s27 + $0x158] sm:$0xff]  ;;  %6436 = vst [vmem:[#allocation31_spill] sm:$0xff] %v5421_v49  ;;  %v5436_v60 = vld [vmem:[%s5017_s27 + $0x160] sm:$0x3]  ;;  %v5439_v19 = vsel %vm1025_vm3, %v1056_v62, %v1057_v33 }
  0x43   : > { %4101 = vmatprep.mubr.msk.f32.mxu1 %vm439_vm2, %v5361_v39  ;;  %4327 = vmatprep.mubr.msk.f32.mxu0 %vm439_vm2, %v5369_v37  ;;  %6434 = vst [vmem:[#allocation29_spill] sm:$0xff] %v5395_v27  ;;  %v423_v39 = vrot.slane %v5377_v12, 1  ;;  %v5428_v37 = vsel %vm1025_vm3, %v1052_v13, %v1054_v44  ;;  %v5447_v44 = vld [vmem:[%s5017_s27 + $0x170] sm:$0xff]  ;;  %v5459_v13 = vsel %vm1025_vm3, %v1057_v33, %v1059_v34  ;;  %v430_v62 = vrot.slane %v5436_v60, 1 }
  0x44   : > { %6437 = vst [vmem:[#allocation32_spill] sm:$0xff] %v5428_v37  ;;  %6439 = vst [vmem:[#allocation34_spill] sm:$0xff] %v5447_v44  ;;  %v1066_v34 = vrot.slane %v5194_v3, 2  ;;  %v1067_v33 = vrot.slane %v5197_v7, 2 }
  0x45   : > { %6441 = vst [vmem:[#allocation36_spill] sm:$0xff] %v5459_v13 }
  0x46   : > { %4102 = vmatmul.mubr.msk.f32.gmra.mrb[22].mxu1 %vm439_vm2, %v5386_v0  ;;  %4328 = vmatmul.mubr.msk.f32.gmra.mrb[6].mxu0 %vm439_vm2, %v5389_v23  ;;  %v5431_v0 = vsel %vm356_vm1, %v422_v38, %v423_v39  ;;  %v427_v23 = vrot.slane %v5409_v20, 1  ;;  %v5456_v38 = vsel %vm356_vm1, %v423_v39, %v425_v41  ;;  %v5474_v39 = vsel %vm1025_vm3, %v1061_v57, %v1062_v61 }
  0x47   : > { %4104 = vmatprep.mubr.msk.f32.mxu1 %vm439_vm2, %v5395_v27  ;;  %4330 = vmatprep.mubr.msk.f32.mxu0 %vm439_vm2, %v5404_v40  ;;  %6438 = vst [vmem:[#allocation33_spill] sm:$0xff] %v5431_v0  ;;  %v428_v27 = vrot.slane %v5412_v54, 1  ;;  %v5444_v40 = vld [vmem:[%s5017_s27 + $0x168] sm:$0xff]  ;;  %6440 = vst [vmem:[#allocation35_spill] sm:$0xff] %v5456_v38 }
  0x49   : > { %v5465_v14 = vsel %vm356_vm1, %v427_v23, %v428_v27  ;;  %v435_v23 = vrot.slane %v5471_v48, 1 }
  0x4a   : > { %4105 = vmatmul.mubr.msk.f32.gmra.mrb[24].mxu1 %vm439_vm2, %v5421_v49  ;;  %4331 = vmatmul.mubr.msk.f32.gmra.mrb[8].mxu0 %vm439_vm2, %v5428_v37  ;;  %6442 = vst [vmem:[#allocation37_spill] sm:$0xff] %v5465_v14  ;;  %v1064_v49 = vrot.slane %v5189_v2, 2  ;;  %v432_v37 = vrot.slane %v5444_v40, 1  ;;  %v5485_v2 = vsel %vm356_vm1, %v428_v27, %v430_v62  ;;  %v1072_v27 = vrot.slane %v5238_v29, 2 }
  0x4b   : > { %4107 = vmatprep.mubr.msk.f32.mxu1 %vm439_vm2, %v5431_v0  ;;  %4333 = vmatprep.mubr.msk.f32.mxu0 %vm439_vm2, %v5439_v19  ;;  %v433_v0 = vrot.slane %v5447_v44, 1  ;;  %6443 = vst [vmem:[#allocation38_spill] sm:$0xff] %v5485_v2  ;;  %v1076_v62 = vrot.slane %v5263_v53, 2 }
  0x4c   : > { %v5491_v41 = vsel %vm1025_vm3, %v1062_v61, %v1064_v49  ;;  %v1074_v49 = vrot.slane %v5255_v45, 2 }
  0x4d   : > { %v5494_v57 = vsel %vm356_vm1, %v432_v37, %v433_v0  ;;  %v5509_v37 = vsel %vm356_vm1, %v433_v0, %v435_v23  ;;  %v5544_v23 = vld [vmem:[%s6331_s1 + $0xc] sm:$0xf] }
  0x4e   : > { %4108 = vmatmul.mubr.msk.f32.gmra.mrb[26].mxu1 %vm439_vm2, %v5456_v38  ;;  %4334 = vmatmul.mubr.msk.f32.gmra.mrb[10].mxu0 %vm439_vm2, %v5459_v13  ;;  %6444 = vst [vmem:[#allocation39_spill] sm:$0xff] %v5494_v57  ;;  %v1069_v38 = vrot.slane %v5215_v17, 2  ;;  %v5498_v13 = vsel %vm1025_vm3, %v1066_v34, %v1067_v33  ;;  %6445 = vst [vmem:[#allocation40_spill] sm:$0xff] %v5509_v37  ;;  %v1077_v34 = vrot.slane %v5266_v55, 2 }
  0x4f   : > { %4110 = vmatprep.mubr.msk.f32.mxu1 %vm439_vm2, %v5465_v14  ;;  %4336 = vmatprep.mubr.msk.f32.mxu0 %vm439_vm2, %v5474_v39  ;;  %v1071_v14 = vrot.slane %v5235_v28, 2  ;;  %v5531_v45 = vsel %vm1025_vm3, %v1072_v27, %v1074_v49 }
  0x50   : > { %v5514_v17 = vsel %vm1025_vm3, %v1067_v33, %v1069_v38  ;;  %v5535_v0 = vsel %vm1025_vm3, %v1076_v62, %v1077_v34  ;;  %v1081_v38 = vrot.slane %v5295_v22, 2  ;;  %v1082_v33 = vrot.slane %v5298_v24, 2 }
  0x51   : > { %v5518_v61 = vsel %vm1025_vm3, %v1071_v14, %v1072_v27  ;;  %v1079_v14 = vrot.slane %v5287_v16, 2  ;;  %v1084_v27 = vrot.slane %v5329_v56, 2  ;;  %v1086_v62 = vrot.slane %v5337_v8, 2 }
  0x52   : > { %4111 = vmatmul.mubr.msk.f32.gmra.mrb[28].mxu1 %vm439_vm2, %v5485_v2  ;;  %4337 = vmatmul.mubr.msk.f32.gmra.mrb[12].mxu0 %vm439_vm2, %v5491_v41  ;;  %v5559_v49 = vsel %vm1025_vm3, %v1081_v38, %v1082_v33  ;;  %v1091_v38 = vrot.slane %v5374_v46, 2  ;;  %v1102_v2 = vrot.slane %v5447_v44, 2 }
  0x53   : > { %4113 = vmatprep.mubr.msk.f32.mxu1 %vm439_vm2, %v5494_v57  ;;  %4339 = vmatprep.mubr.msk.f32.mxu0 %vm439_vm2, %v5498_v13  ;;  %v5555_v16 = vsel %vm1025_vm3, %v1077_v34, %v1079_v14  ;;  %6446 = vst [vmem:[#allocation41_spill] sm:$0xff] %v5559_v49  ;;  %v5574_v56 = vsel %vm1025_vm3, %v1082_v33, %v1084_v27  ;;  %v1089_v34 = vrot.slane %v5366_v52, 2  ;;  %v1094_v33 = vrot.slane %v5401_v36, 2 }
  0x54   : > { %v1097_v57 = vrot.slane %v5412_v54, 2 }
  0x56   : > { %4114 = vmatmul.mubr.msk.f32.gmra.mrb[30].mxu1 %vm439_vm2, %v5509_v37  ;;  %4340 = vmatmul.mubr.msk.f32.gmra.mrb[14].mxu0 %vm439_vm2, %v5514_v17  ;;  %v1092_v37 = vrot.slane %v5377_v12, 2 }
  0x57   : > { %4118 = vmatprep.mubr.msk.f32.mxu1 %vm439_vm2, %v5020_v4  ;;  %4342 = vmatprep.mubr.msk.f32.mxu0 %vm439_vm2, %v5518_v61 }
  0x58   : > { %v5595_v27 = vsel %vm1025_vm3, %v1091_v38, %v1092_v37  ;;  %v5608_v36 = vsel %vm1025_vm3, %v1092_v37, %v1094_v33  ;;  %v1101_v38 = vrot.slane %v5444_v40, 2  ;;  %v1104_v37 = vrot.slane %v5471_v48, 2 }
  0x59   : > { %6448 = vst [vmem:[#allocation43_spill] sm:$0xff] %v5595_v27  ;;  %6449 = vst [vmem:[#allocation44_spill] sm:$0xff] %v5608_v36 }
  0x5a   : > { %4119 = vmatmul.mubr.msk.f32.vlgmr.msra.gmra.mrb[0].mxu1 %vm439_vm2, %v5023_v5  ;;  %4343 = vmatmul.mubr.msk.f32.gmra.mrb[16].mxu0 %vm439_vm2, %v5531_v45  ;;  %v5635_v33 = vsel %vm1025_vm3, %v1101_v38, %v1102_v2  ;;  %v5651_v48 = vsel %vm1025_vm3, %v1102_v2, %v1104_v37  ;;  %v1027_v38 = vrot.slane %v5023_v5, 2  ;;  %v1029_v37 = vrot.slane %v5035_v11, 2  ;;  %v6456_v5 = vld [vmem:[#allocation20_spill] sm:$0xff]  ;;  %v6457_v11 = vld [vmem:[#allocation22_spill] sm:$0xff] }
  0x5b   : > { %4167 = vmatpush3.msk.msra.mxu1 %vm504_vm0, %v5092_v35  ;;  %4121 = vmatprep.mubr.msk.f32.mxu1 %vm439_vm2, %v5026_v6  ;;  %v1087_v35 = vrot.slane %v5340_v10, 2  ;;  %v5622_v6 = vld [vmem:[%s5017_s27 + $0x188] sm:$0xff]  ;;  %6452 = vst [vmem:[#allocation47_spill] sm:$0xff] %v5635_v33  ;;  %6453 = vst [vmem:[#allocation48_spill] sm:$0xff] %v5651_v48 }
  0x5c   : > { %4345 = vmatprep.mubr.msk.f32.mxu0 %vm439_vm2, %v5535_v0  ;;  %4216 = vmatprep.subr.msk.mxu1 %vm504_vm0, %v5544_v23 }
  0x5d   : > { %v5578_v14 = vsel %vm1025_vm3, %v1086_v62, %v1087_v35  ;;  %v5591_v52 = vsel %vm1025_vm3, %v1087_v35, %v1089_v34  ;;  %v1096_v62 = vrot.slane %v5409_v20, 2  ;;  %v1099_v35 = vrot.slane %v5436_v60, 2 }
  0x5e   : > { %4122 = vmatmul.mubr.msk.f32.gmra.mrb[2].mxu1 %vm439_vm2, %v5031_v9  ;;  %4346 = vmatmul.mubr.msk.f32.gmra.mrb[18].mxu0 %vm439_vm2, %v5555_v16  ;;  %6447 = vst [vmem:[#allocation42_spill] sm:$0xff] %v5591_v52  ;;  %v5619_v9 = vld [vmem:[%s5017_s27 + $0x180] sm:$0xff] }
  0x5f   : > { %4124 = vmatprep.mubr.msk.f32.mxu1 %vm439_vm2, %v5043_v15  ;;  %4348 = vmatprep.mubr.msk.f32.mxu0 %vm439_vm2, %v5559_v49  ;;  %v5612_v34 = vsel %vm1025_vm3, %v1096_v62, %v1097_v57  ;;  %v5631_v60 = vsel %vm1025_vm3, %v1097_v57, %v1099_v35  ;;  %v1972_v62 = vrot.slane %v5619_v9, 2 }
  0x60   : > { %6450 = vst [vmem:[#allocation45_spill] sm:$0xff] %v5612_v34  ;;  %6451 = vst [vmem:[#allocation46_spill] sm:$0xff] %v5631_v60 }
  0x62   : > { %4125 = vmatmul.mubr.msk.f32.gmra.mrb[4].mxu1 %vm439_vm2, %v5048_v18  ;;  %4349 = vmatmul.mubr.msk.f32.gmra.mrb[20].mxu0 %vm439_vm2, %v5574_v56 }
  0x63   : > { %4127 = vmatprep.mubr.msk.f32.mxu1 %vm439_vm2, %v5060_v25  ;;  %4351 = vmatprep.mubr.msk.f32.mxu0 %vm439_vm2, %v5578_v14 }
  0x66   : > { %4128 = vmatmul.mubr.msk.f32.gmra.mrb[6].mxu1 %vm439_vm2, %v5063_v26  ;;  %4352 = vmatmul.mubr.msk.f32.gmra.mrb[22].mxu0 %vm439_vm2, %v5591_v52  ;;  %v5640_v52 = vld [vmem:[%s5017_s27 + $0x190] sm:$0x3] }
  0x67   : > { %4130 = vmatprep.mubr.msk.f32.mxu1 %vm439_vm2, %v5074_v31  ;;  %4354 = vmatprep.mubr.msk.f32.mxu0 %vm439_vm2, %v5595_v27  ;;  %v1973_v27 = vrot.slane %v5622_v6, 2  ;;  %v1975_v57 = vrot.slane %v5640_v52, 2 }
  0x69   : > { %v5655_v35 = vsel %vm1025_vm3, %v1972_v62, %v1973_v27  ;;  %v5666_v2 = vsel %vm1025_vm3, %v1973_v27, %v1975_v57  ;;  %v5681_v27 = vld [vmem:[%s6331_s1 + $0x20] sm:$0xf] }
  0x6a   : > { %4131 = vmatmul.mubr.msk.f32.gmra.mrb[8].mxu1 %vm439_vm2, %v5077_v32  ;;  %4355 = vmatmul.mubr.msk.f32.gmra.mrb[24].mxu0 %vm439_vm2, %v5608_v36  ;;  %6454 = vst [vmem:[#allocation49_spill] sm:$0xff] %v5655_v35  ;;  %6455 = vst [vmem:[#allocation50_spill] sm:$0xff] %v5666_v2  ;;  %v6461_v57 = vld [vmem:[#allocation30_spill] sm:$0xff] }
  0x6b   : > { %4133 = vmatprep.mubr.msk.f32.mxu1 %vm439_vm2, %v5114_v42  ;;  %4357 = vmatprep.mubr.msk.f32.mxu0 %vm439_vm2, %v5612_v34 }
  0x6e   : > { %4134 = vmatmul.mubr.msk.f32.gmra.mrb[10].mxu1 %vm439_vm2, %v5117_v43  ;;  %4358 = vmatmul.mubr.msk.f32.gmra.mrb[26].mxu0 %vm439_vm2, %v5631_v60 }
  0x6f   : > { %4136 = vmatprep.mubr.msk.f32.mxu1 %vm439_vm2, %v5142_v50  ;;  %4360 = vmatprep.mubr.msk.f32.mxu0 %vm439_vm2, %v5635_v33 }
  0x72   : > { %4137 = vmatmul.mubr.msk.f32.gmra.mrb[12].mxu1 %vm439_vm2, %v5145_v51  ;;  %4361 = vmatmul.mubr.msk.f32.gmra.mrb[28].mxu0 %vm439_vm2, %v5651_v48 }
  0x73   : > { %4139 = vmatprep.mubr.msk.f32.mxu1 %vm439_vm2, %v5168_v58  ;;  %4363 = vmatprep.mubr.msk.f32.mxu0 %vm439_vm2, %v5655_v35  ;;  %v6466_v35 = vld [vmem:[#allocation6_spill] sm:$0xff] }
  0x76   : > { %4140 = vmatmul.mubr.msk.f32.gmra.mrb[14].mxu1 %vm439_vm2, %v5171_v59  ;;  %4364 = vmatmul.mubr.msk.f32.gmra.mrb[30].mxu0 %vm439_vm2, %v5666_v2  ;;  %v6465_v2 = vld [vmem:[#allocation5_spill] sm:$0xff] }
  0x77   : > { %4142 = vmatprep.mubr.msk.f32.mxu1 %vm439_vm2, %v5194_v3  ;;  %4368 = vmatprep.mubr.msk.f32.mxu0 %vm439_vm2, %v5043_v15 }
  0x7a   : > { %4143 = vmatmul.mubr.msk.f32.gmra.mrb[16].mxu1 %vm439_vm2, %v5197_v7  ;;  %4369 = vmatmul.mubr.msk.f32.vlgmr.msra.gmra.mrb[0].mxu0 %vm439_vm2, %v5048_v18 }
  0x7b   : > { %4145 = vmatprep.mubr.msk.f32.mxu1 %vm439_vm2, %v5235_v28  ;;  %4417 = vmatpush3.msk.msra.mxu0 %vm504_vm0, %v5305_v30  ;;  %v1026_v30 = vrot.slane %v5020_v4, 2  ;;  %v1030_v4 = vsel %vm1025_vm3, %v1027_v38, %v1029_v37  ;;  %v6463_v37 = vld [vmem:[#allocation36_spill] sm:$0xff] }
  0x7c   : > { %4371 = vmatprep.mubr.msk.f32.mxu0 %vm439_vm2, %v5060_v25  ;;  %4466 = vmatprep.subr.msk.mxu0 %vm504_vm0, %v5681_v27 }
  0x7d   : > { %v1028_v62 = vsel %vm1025_vm3, %v1026_v30, %v1027_v38  ;;  %v6462_v30 = vld [vmem:[#allocation32_spill] sm:$0xff]  ;;  %v5805_v38 = vld [vmem:[%s5017_s27 + $0x198] sm:$0xff] }
  0x7e   : > { %4146 = vmatmul.mubr.msk.f32.gmra.mrb[18].mxu1 %vm439_vm2, %v5238_v29  ;;  %4372 = vmatmul.mubr.msk.f32.gmra.mrb[2].mxu0 %vm439_vm2, %v5063_v26 }
  0x7f   : > { %4148 = vmatprep.mubr.msk.f32.mxu1 %vm439_vm2, %v5263_v53  ;;  %4374 = vmatprep.mubr.msk.f32.mxu0 %vm439_vm2, %v5074_v31 }
  0x82   : > { %4149 = vmatmul.mubr.msk.f32.gmra.mrb[20].mxu1 %vm439_vm2, %v5266_v55  ;;  %4375 = vmatmul.mubr.msk.f32.gmra.mrb[4].mxu0 %vm439_vm2, %v5077_v32 }
  0x83   : > { %4151 = vmatprep.mubr.msk.f32.mxu1 %vm439_vm2, %v5295_v22  ;;  %4377 = vmatprep.mubr.msk.f32.mxu0 %vm439_vm2, %v5114_v42 }
  0x86   : > { %4152 = vmatmul.mubr.msk.f32.gmra.mrb[22].mxu1 %vm439_vm2, %v5298_v24  ;;  %4378 = vmatmul.mubr.msk.f32.gmra.mrb[6].mxu0 %vm439_vm2, %v5117_v43 }
  0x87   : > { %4154 = vmatprep.mubr.msk.f32.mxu1 %vm439_vm2, %v5337_v8  ;;  %4380 = vmatprep.mubr.msk.f32.mxu0 %vm439_vm2, %v5142_v50 }
  0x8a   : > { %4155 = vmatmul.mubr.msk.f32.gmra.mrb[24].mxu1 %vm439_vm2, %v5340_v10  ;;  %4381 = vmatmul.mubr.msk.f32.gmra.mrb[8].mxu0 %vm439_vm2, %v5145_v51 }
  0x8b   : > { %4157 = vmatprep.mubr.msk.f32.mxu1 %vm439_vm2, %v5374_v46  ;;  %4383 = vmatprep.mubr.msk.f32.mxu0 %vm439_vm2, %v5168_v58 }
  0x8e   : > { %4158 = vmatmul.mubr.msk.f32.gmra.mrb[26].mxu1 %vm439_vm2, %v5377_v12  ;;  %4384 = vmatmul.mubr.msk.f32.gmra.mrb[10].mxu0 %vm439_vm2, %v5171_v59 }
  0x8f   : > { %4160 = vmatprep.mubr.msk.f32.mxu1 %vm439_vm2, %v5409_v20  ;;  %4386 = vmatprep.mubr.msk.f32.mxu0 %vm439_vm2, %v5194_v3 }
  0x92   : > { %4161 = vmatmul.mubr.msk.f32.gmra.mrb[28].mxu1 %vm439_vm2, %v5412_v54  ;;  %4387 = vmatmul.mubr.msk.f32.gmra.mrb[12].mxu0 %vm439_vm2, %v5197_v7 }
  0x93   : > { %4163 = vmatprep.mubr.msk.f32.mxu1 %vm439_vm2, %v5444_v40  ;;  %4389 = vmatprep.mubr.msk.f32.mxu0 %vm439_vm2, %v5235_v28 }
  0x96   : > { %4164 = vmatmul.mubr.msk.f32.gmra.mrb[30].mxu1 %vm439_vm2, %v5447_v44  ;;  %4390 = vmatmul.mubr.msk.f32.gmra.mrb[14].mxu0 %vm439_vm2, %v5238_v29 }
  0x97   : > { %4168 = vmatprep.mubr.msk.f32.mxu1 %vm439_vm2, %v1028_v62  ;;  %4392 = vmatprep.mubr.msk.f32.mxu0 %vm439_vm2, %v5263_v53  ;;  %v5816_v62 = vld [vmem:[%s5017_s27 + $0x1a0] sm:$0xff] }
  0x9a   : > { %4169 = vmatmul.mubr.msk.f32.vlgmr.msra.gmra.mrb[0].mxu1 %vm439_vm2, %v1030_v4  ;;  %4393 = vmatmul.mubr.msk.f32.gmra.mrb[16].mxu0 %vm439_vm2, %v5266_v55  ;;  %v6464_v4 = vld [vmem:[#allocation4_spill] sm:$0xff] }
  0x9b   : > { %4217 = vmatpush3.msk.msra.mxu1 %vm504_vm0, %v5544_v23  ;;  %4171 = vmatprep.mubr.msk.f32.mxu1 %vm439_vm2, %v5258_v47  ;;  %v6458_v47 = vld [vmem:[#allocation24_spill] sm:$0xff] }
  0x9c   : > { %4395 = vmatprep.mubr.msk.f32.mxu0 %vm439_vm2, %v5295_v22  ;;  %4516 = vmatprep.subr.msk.mxu1 %vm504_vm0, %v4995_v1  ;;  %v6460_v23 = vld [vmem:[#allocation28_spill] sm:$0xff] }
  0x9e   : > { %4172 = vmatmul.mubr.msk.f32.gmra.mrb[2].mxu1 %vm439_vm2, %v5279_v63  ;;  %4396 = vmatmul.mubr.msk.f32.gmra.mrb[18].mxu0 %vm439_vm2, %v5298_v24  ;;  %v6459_v63 = vld [vmem:[#allocation26_spill] sm:$0xff] }
  0x9f   : > { %4174 = vmatprep.mubr.msk.f32.mxu1 %vm439_vm2, %v5290_v21  ;;  %4398 = vmatprep.mubr.msk.f32.mxu0 %vm439_vm2, %v5337_v8 }
  0xa2   : > { %4175 = vmatmul.mubr.msk.f32.gmra.mrb[4].mxu1 %vm439_vm2, %v6456_v5  ;;  %4399 = vmatmul.mubr.msk.f32.gmra.mrb[20].mxu0 %vm439_vm2, %v5340_v10 }
  0xa3   : > { %4177 = vmatprep.mubr.msk.f32.mxu1 %vm439_vm2, %v6457_v11  ;;  %4401 = vmatprep.mubr.msk.f32.mxu0 %vm439_vm2, %v5374_v46 }
  0xa6   : > { %4178 = vmatmul.mubr.msk.f32.gmra.mrb[6].mxu1 %vm439_vm2, %v6458_v47  ;;  %4402 = vmatmul.mubr.msk.f32.gmra.mrb[22].mxu0 %vm439_vm2, %v5377_v12 }
  0xa7   : > { %4180 = vmatprep.mubr.msk.f32.mxu1 %vm439_vm2, %v6459_v63  ;;  %4404 = vmatprep.mubr.msk.f32.mxu0 %vm439_vm2, %v5409_v20 }
  0xaa   : > { %4181 = vmatmul.mubr.msk.f32.gmra.mrb[8].mxu1 %vm439_vm2, %v6460_v23  ;;  %4405 = vmatmul.mubr.msk.f32.gmra.mrb[24].mxu0 %vm439_vm2, %v5412_v54 }
  0xab   : > { %4183 = vmatprep.mubr.msk.f32.mxu1 %vm439_vm2, %v6461_v57  ;;  %4407 = vmatprep.mubr.msk.f32.mxu0 %vm439_vm2, %v5444_v40 }
  0xae   : > { %4184 = vmatmul.mubr.msk.f32.gmra.mrb[10].mxu1 %vm439_vm2, %v6462_v30  ;;  %4408 = vmatmul.mubr.msk.f32.gmra.mrb[26].mxu0 %vm439_vm2, %v5447_v44  ;;  %v6467_v44 = vld [vmem:[#allocation7_spill] sm:$0xff] }
  0xaf   : > { %4186 = vmatprep.mubr.msk.f32.mxu1 %vm439_vm2, %v5439_v19  ;;  %4410 = vmatprep.mubr.msk.f32.mxu0 %vm439_vm2, %v5619_v9 }
  0xb2   : > { %4187 = vmatmul.mubr.msk.f32.gmra.mrb[12].mxu1 %vm439_vm2, %v6463_v37  ;;  %4411 = vmatmul.mubr.msk.f32.gmra.mrb[28].mxu0 %vm439_vm2, %v5622_v6 }
  0xb3   : > { %4189 = vmatprep.mubr.msk.f32.mxu1 %vm439_vm2, %v5474_v39  ;;  %4413 = vmatprep.mubr.msk.f32.mxu0 %vm439_vm2, %v5805_v38 }
  0xb6   : > { %4190 = vmatmul.mubr.msk.f32.gmra.mrb[14].mxu1 %vm439_vm2, %v5491_v41  ;;  %4414 = vmatmul.mubr.msk.f32.gmra.mrb[30].mxu0 %vm439_vm2, %v5816_v62 }
  0xb7   : > { %4192 = vmatprep.mubr.msk.f32.mxu1 %vm439_vm2, %v5498_v13  ;;  %4418 = vmatprep.mubr.msk.f32.mxu0 %vm439_vm2, %v6464_v4  ;;  %v6468_v4 = vld [vmem:[#allocation8_spill] sm:$0xff] }
  0xba   : > { %4193 = vmatmul.mubr.msk.f32.gmra.mrb[16].mxu1 %vm439_vm2, %v5514_v17  ;;  %4419 = vmatmul.mubr.msk.f32.vlgmr.msra.gmra.mrb[0].mxu0 %vm439_vm2, %v6465_v2  ;;  %v6469_v2 = vld [vmem:[#allocation9_spill] sm:$0xff] }
  0xbb   : > { %4195 = vmatprep.mubr.msk.f32.mxu1 %vm439_vm2, %v5518_v61  ;;  %4467 = vmatpush3.msk.msra.mxu0 %vm504_vm0, %v5681_v27  ;;  %v6472_v27 = vld [vmem:[#allocation12_spill] sm:$0xff] }
  0xbc   : > { %4421 = vmatprep.mubr.msk.f32.mxu0 %vm439_vm2, %v6466_v35  ;;  %v6470_v35 = vld [vmem:[#allocation10_spill] sm:$0xff] }
  0xbe   : > { %4196 = vmatmul.mubr.msk.f32.gmra.mrb[18].mxu1 %vm439_vm2, %v5531_v45  ;;  %4422 = vmatmul.mubr.msk.f32.gmra.mrb[2].mxu0 %vm439_vm2, %v6467_v44  ;;  %v6471_v44 = vld [vmem:[#allocation11_spill] sm:$0xff] }
  0xbf   : > { %4198 = vmatprep.mubr.msk.f32.mxu1 %vm439_vm2, %v5535_v0  ;;  %4424 = vmatprep.mubr.msk.f32.mxu0 %vm439_vm2, %v6468_v4  ;;  %v6473_v4 = vld [vmem:[#allocation42_spill] sm:$0xff] }
  0xc2   : > { %4199 = vmatmul.mubr.msk.f32.gmra.mrb[20].mxu1 %vm439_vm2, %v5555_v16  ;;  %4425 = vmatmul.mubr.msk.f32.gmra.mrb[4].mxu0 %vm439_vm2, %v6469_v2  ;;  %v6474_v2 = vld [vmem:[#allocation13_spill] sm:$0xff] }
  0xc3   : > { %4201 = vmatprep.mubr.msk.f32.mxu1 %vm439_vm2, %v5559_v49  ;;  %4427 = vmatprep.mubr.msk.f32.mxu0 %vm439_vm2, %v6470_v35  ;;  %v6475_v49 = vld [vmem:[#allocation43_spill] sm:$0xff]  ;;  %v6476_v35 = vld [vmem:[#allocation14_spill] sm:$0xff] }
  0xc6   : > { %4202 = vmatmul.mubr.msk.f32.gmra.mrb[22].mxu1 %vm439_vm2, %v5574_v56  ;;  %4428 = vmatmul.mubr.msk.f32.gmra.mrb[6].mxu0 %vm439_vm2, %v6471_v44  ;;  %v6477_v44 = vld [vmem:[#allocation15_spill] sm:$0xff] }
  0xc7   : > { %4204 = vmatprep.mubr.msk.f32.mxu1 %vm439_vm2, %v5578_v14  ;;  %4430 = vmatprep.mubr.msk.f32.mxu0 %vm439_vm2, %v6472_v27  ;;  %v6478_v27 = vld [vmem:[#allocation16_spill] sm:$0xff] }
  0xca   : > { %4205 = vmatmul.mubr.msk.f32.gmra.mrb[24].mxu1 %vm439_vm2, %v6473_v4  ;;  %4431 = vmatmul.mubr.msk.f32.gmra.mrb[8].mxu0 %vm439_vm2, %v6474_v2  ;;  %v6479_v2 = vld [vmem:[#allocation17_spill] sm:$0xff] }
  0xcb   : > { %4207 = vmatprep.mubr.msk.f32.mxu1 %vm439_vm2, %v6475_v49  ;;  %4433 = vmatprep.mubr.msk.f32.mxu0 %vm439_vm2, %v6476_v35  ;;  %v6480_v35 = vld [vmem:[#allocation18_spill] sm:$0xff] }
  0xce   : > { %4208 = vmatmul.mubr.msk.f32.gmra.mrb[26].mxu1 %vm439_vm2, %v5608_v36  ;;  %4434 = vmatmul.mubr.msk.f32.gmra.mrb[10].mxu0 %vm439_vm2, %v6477_v44  ;;  %v6481_v44 = vld [vmem:[#allocation19_spill] sm:$0xff] }
  0xcf   : > { %4210 = vmatprep.mubr.msk.f32.mxu1 %vm439_vm2, %v5612_v34  ;;  %4436 = vmatprep.mubr.msk.f32.mxu0 %vm439_vm2, %v6478_v27  ;;  %v6482_v34 = vld [vmem:[#allocation2_spill] sm:$0xff]  ;;  %v6483_v27 = vld [vmem:[#allocation21_spill] sm:$0xff]  ;;  %v5943_v36 = vld [vmem:[%s5017_s27 + $0x1a8] sm:$0x3] }
  0xd2   : > { %4211 = vmatmul.mubr.msk.f32.gmra.mrb[28].mxu1 %vm439_vm2, %v5631_v60  ;;  %4437 = vmatmul.mubr.msk.f32.gmra.mrb[12].mxu0 %vm439_vm2, %v6479_v2  ;;  %v6484_v60 = vld [vmem:[#allocation3_spill] sm:$0xff] }
  0xd3   : > { %4213 = vmatprep.mubr.msk.f32.mxu1 %vm439_vm2, %v5635_v33  ;;  %4439 = vmatprep.mubr.msk.f32.mxu0 %vm439_vm2, %v6480_v35  ;;  %v6485_v2 = vld [vmem:[#allocation23_spill] sm:$0xff]  ;;  %v6493_v33 = vld [vmem:[#allocation38_spill] sm:$0xff] }
  0xd6   : > { %4214 = vmatmul.mubr.msk.f32.gmra.mrb[30].mxu1 %vm439_vm2, %v5651_v48  ;;  %4440 = vmatmul.mubr.msk.f32.gmra.mrb[14].mxu0 %vm439_vm2, %v6481_v44  ;;  %v6486_v48 = vld [vmem:[#allocation25_spill] sm:$0xff] }
  0xd7   : > { %4218 = vmatprep.mubr.msk.f32.mxu1 %vm439_vm2, %v6482_v34  ;;  %4442 = vmatprep.mubr.msk.f32.mxu0 %vm439_vm2, %v6483_v27  ;;  %v6487_v34 = vld [vmem:[#allocation27_spill] sm:$0xff] }
  0xda   : > { %4219 = vmatmul.mubr.msk.f32.vlgmr.msra.gmra.mrb[0].mxu1 %vm439_vm2, %v6484_v60  ;;  %4443 = vmatmul.mubr.msk.f32.gmra.mrb[16].mxu0 %vm439_vm2, %v6485_v2  ;;  %v6488_v60 = vld [vmem:[#allocation29_spill] sm:$0xff] }
  0xdb   : > { %4517 = vmatpush3.msk.msra.mxu1 %vm504_vm0, %v4995_v1  ;;  %4221 = vmatprep.mubr.msk.f32.mxu1 %vm439_vm2, %v5043_v15  ;;  %v6489_v1 = vld [vmem:[#allocation31_spill] sm:$0xff]  ;;  %v6490_v15 = vld [vmem:[#allocation33_spill] sm:$0xff] }
  0xdc   : > { %4445 = vmatprep.mubr.msk.f32.mxu0 %vm439_vm2, %v6486_v48 }
  0xde   : > { %4222 = vmatmul.mubr.msk.f32.gmra.mrb[2].mxu1 %vm439_vm2, %v5048_v18  ;;  %4446 = vmatmul.mubr.msk.f32.gmra.mrb[18].mxu0 %vm439_vm2, %v6487_v34  ;;  %v6491_v18 = vld [vmem:[#allocation35_spill] sm:$0xff] }
  0xdf   : > { %4224 = vmatprep.mubr.msk.f32.mxu1 %vm439_vm2, %v5060_v25  ;;  %4448 = vmatprep.mubr.msk.f32.mxu0 %vm439_vm2, %v6488_v60  ;;  %v6492_v25 = vld [vmem:[#allocation37_spill] sm:$0xff] }
  0xe2   : > { %4225 = vmatmul.mubr.msk.f32.gmra.mrb[4].mxu1 %vm439_vm2, %v5063_v26  ;;  %4449 = vmatmul.mubr.msk.f32.gmra.mrb[20].mxu0 %vm439_vm2, %v6489_v1  ;;  %v1701_v26 = vrot.slane %v5619_v9, 1 }
  0xe3   : > { %4227 = vmatprep.mubr.msk.f32.mxu1 %vm439_vm2, %v5074_v31  ;;  %4451 = vmatprep.mubr.msk.f32.mxu0 %vm439_vm2, %v6490_v15  ;;  %v1702_v31 = vrot.slane %v5622_v6, 1 }
  0xe5   : > { %v5940_v15 = vsel %vm356_vm1, %v1701_v26, %v1702_v31 }
  0xe6   : > { %4228 = vmatmul.mubr.msk.f32.gmra.mrb[6].mxu1 %vm439_vm2, %v5077_v32  ;;  %4452 = vmatmul.mubr.msk.f32.gmra.mrb[22].mxu0 %vm439_vm2, %v6491_v18  ;;  %v6494_v32 = vld [vmem:[#allocation39_spill] sm:$0xff]  ;;  %v2513_v18 = vrot.slane %v5816_v62, 1 }
  0xe7   : > { %4230 = vmatprep.mubr.msk.f32.mxu1 %vm439_vm2, %v5114_v42  ;;  %4454 = vmatprep.mubr.msk.f32.mxu0 %vm439_vm2, %v6492_v25  ;;  %v1704_v42 = vrot.slane %v5640_v52, 1  ;;  %v2512_v25 = vrot.slane %v5805_v38, 1  ;;  %v2515_v52 = vrot.slane %v5943_v36, 1 }
  0xe9   : > { %v2514_v26 = vsel %vm356_vm1, %v2512_v25, %v2513_v18 }
  0xea   : > { %4231 = vmatmul.mubr.msk.f32.gmra.mrb[8].mxu1 %vm439_vm2, %v5117_v43  ;;  %4455 = vmatmul.mubr.msk.f32.gmra.mrb[24].mxu0 %vm439_vm2, %v6493_v33  ;;  %v6495_v43 = vld [vmem:[#allocation40_spill] sm:$0xff] }
  0xeb   : > { %4233 = vmatprep.mubr.msk.f32.mxu1 %vm439_vm2, %v5142_v50  ;;  %4457 = vmatprep.mubr.msk.f32.mxu0 %vm439_vm2, %v6494_v32  ;;  %v5954_v50 = vsel %vm356_vm1, %v1702_v31, %v1704_v42 }
  0xee   : > { %4234 = vmatmul.mubr.msk.f32.gmra.mrb[10].mxu1 %vm439_vm2, %v5145_v51  ;;  %4458 = vmatmul.mubr.msk.f32.gmra.mrb[26].mxu0 %vm439_vm2, %v6495_v43  ;;  %v2516_v51 = vsel %vm356_vm1, %v2513_v18, %v2515_v52 }
  0xef   : > { %4236 = vmatprep.mubr.msk.f32.mxu1 %vm439_vm2, %v5168_v58  ;;  %4460 = vmatprep.mubr.msk.f32.mxu0 %vm439_vm2, %v5940_v15  ;;  %v6499_v58 = vld [vmem:[#allocation33_spill] sm:$0xff] }
  0xf2   : > { %4237 = vmatmul.mubr.msk.f32.gmra.mrb[12].mxu1 %vm439_vm2, %v5171_v59  ;;  %4461 = vmatmul.mubr.msk.f32.gmra.mrb[28].mxu0 %vm439_vm2, %v5954_v50  ;;  %v6500_v59 = vld [vmem:[#allocation45_spill] sm:$0xff] }
  0xf3   : > { %4239 = vmatprep.mubr.msk.f32.mxu1 %vm439_vm2, %v5194_v3  ;;  %4463 = vmatprep.mubr.msk.f32.mxu0 %vm439_vm2, %v2514_v26  ;;  %v6501_v3 = vld [vmem:[#allocation35_spill] sm:$0xff] }
  0xf6   : > { %4240 = vmatmul.mubr.msk.f32.gmra.mrb[14].mxu1 %vm439_vm2, %v5197_v7  ;;  %4464 = vmatmul.mubr.msk.f32.gmra.mrb[30].mxu0 %vm439_vm2, %v2516_v51  ;;  %v6502_v7 = vld [vmem:[#allocation46_spill] sm:$0xff] }
  0xf7   : > { %4242 = vmatprep.mubr.msk.f32.mxu1 %vm439_vm2, %v5235_v28  ;;  %4468 = vmatprep.mubr.msk.f32.mxu0 %vm439_vm2, %v5290_v21  ;;  %v2783_v28 = vrot.slane %v5805_v38, 2  ;;  %v2786_v21 = vrot.slane %v5943_v36, 2 }
  0xfa   : > { %4243 = vmatmul.mubr.msk.f32.gmra.mrb[16].mxu1 %vm439_vm2, %v5238_v29  ;;  %4469 = vmatmul.mubr.msk.f32.vlgmr.msra.gmra.mrb[0].mxu0 %vm439_vm2, %v6456_v5  ;;  %v2784_v29 = vrot.slane %v5816_v62, 2 }
  0xfb   : > { %4245 = vmatprep.mubr.msk.f32.mxu1 %vm439_vm2, %v5263_v53  ;;  %4471 = vmatprep.mubr.msk.f32.mxu0 %vm439_vm2, %v6457_v11  ;;  %v6505_v53 = vld [vmem:[#allocation48_spill] sm:$0xff] }
  0xfe   : > { %4246 = vmatmul.mubr.msk.f32.gmra.mrb[18].mxu1 %vm439_vm2, %v5266_v55  ;;  %4472 = vmatmul.mubr.msk.f32.gmra.mrb[2].mxu0 %vm439_vm2, %v6458_v47  ;;  %v6506_v55 = vld [vmem:[#allocation49_spill] sm:$0xff] }
  0xff   : > { %4248 = vmatprep.mubr.msk.f32.mxu1 %vm439_vm2, %v5295_v22  ;;  %4474 = vmatprep.mubr.msk.f32.mxu0 %vm439_vm2, %v6459_v63  ;;  %v6504_v22 = vld [vmem:[#allocation47_spill] sm:$0xff] }
 0x102   : > { %4249 = vmatmul.mubr.msk.f32.gmra.mrb[20].mxu1 %vm439_vm2, %v5298_v24  ;;  %4475 = vmatmul.mubr.msk.f32.gmra.mrb[4].mxu0 %vm439_vm2, %v6460_v23  ;;  %v2785_v24 = vsel %vm1025_vm3, %v2783_v28, %v2784_v29 }
 0x103   : > { %4251 = vmatprep.mubr.msk.f32.mxu1 %vm439_vm2, %v5337_v8  ;;  %4477 = vmatprep.mubr.msk.f32.mxu0 %vm439_vm2, %v6461_v57  ;;  %v6503_v8 = vld [vmem:[#allocation37_spill] sm:$0xff] }
 0x106   : > { %4252 = vmatmul.mubr.msk.f32.gmra.mrb[22].mxu1 %vm439_vm2, %v5340_v10  ;;  %4478 = vmatmul.mubr.msk.f32.gmra.mrb[6].mxu0 %vm439_vm2, %v6462_v30  ;;  %v6507_v10 = vld [vmem:[#allocation50_spill] sm:$0xff] }
 0x107   : > { %4254 = vmatprep.mubr.msk.f32.mxu1 %vm439_vm2, %v5374_v46  ;;  %4480 = vmatprep.mubr.msk.f32.mxu0 %vm439_vm2, %v5439_v19  ;;  %v6496_v46 = vld [vmem:[#allocation34_spill] sm:$0xff] }
 0x10a   : > { %4255 = vmatmul.mubr.msk.f32.gmra.mrb[24].mxu1 %vm439_vm2, %v5377_v12  ;;  %4481 = vmatmul.mubr.msk.f32.gmra.mrb[8].mxu0 %vm439_vm2, %v6463_v37  ;;  %v2787_v12 = vsel %vm1025_vm3, %v2784_v29, %v2786_v21 }
 0x10b   : > { %4257 = vmatprep.mubr.msk.f32.mxu1 %vm439_vm2, %v5409_v20  ;;  %4483 = vmatprep.mubr.msk.f32.mxu0 %vm439_vm2, %v5474_v39 }
 0x10e   : > { %4258 = vmatmul.mubr.msk.f32.gmra.mrb[26].mxu1 %vm439_vm2, %v5412_v54  ;;  %4484 = vmatmul.mubr.msk.f32.gmra.mrb[10].mxu0 %vm439_vm2, %v5491_v41 }
 0x10f   : > { %4260 = vmatprep.mubr.msk.f32.mxu1 %vm439_vm2, %v5444_v40  ;;  %4486 = vmatprep.mubr.msk.f32.mxu0 %vm439_vm2, %v5498_v13 }
 0x112   : > { %4261 = vmatmul.mubr.msk.f32.gmra.mrb[28].mxu1 %vm439_vm2, %v6496_v46  ;;  %4487 = vmatmul.mubr.msk.f32.gmra.mrb[12].mxu0 %vm439_vm2, %v5514_v17 }
 0x113   : > { %4263 = vmatprep.mubr.msk.f32.mxu1 %vm439_vm2, %v5619_v9  ;;  %4489 = vmatprep.mubr.msk.f32.mxu0 %vm439_vm2, %v5518_v61  ;;  %v6497_v9 = vld [vmem:[#allocation41_spill] sm:$0xff] }
 0x116   : > { %4264 = vmatmul.mubr.msk.f32.gmra.mrb[30].mxu1 %vm439_vm2, %v5622_v6  ;;  %4490 = vmatmul.mubr.msk.f32.gmra.mrb[14].mxu0 %vm439_vm2, %v5531_v45  ;;  %v6498_v6 = vld [vmem:[#allocation44_spill] sm:$0xff] }
 0x117   : > { %4292 = vmatprep.mubr.msk.f32.mxu1 %vm439_vm2, %v6480_v35  ;;  %4492 = vmatprep.mubr.msk.f32.mxu0 %vm439_vm2, %v5535_v0 }
 0x11a   : > { %4293 = vmatmul.mubr.msk.f32.vlgmr.msra.gmra.mrb[16].mxu1 %vm439_vm2, %v6481_v44  ;;  %4493 = vmatmul.mubr.msk.f32.gmra.mrb[16].mxu0 %vm439_vm2, %v5555_v16 }
 0x11b   : > { %4295 = vmatprep.mubr.msk.f32.mxu1 %vm439_vm2, %v6483_v27  ;;  %4495 = vmatprep.mubr.msk.f32.mxu0 %vm439_vm2, %v6497_v9 }
 0x11e   : > { %4296 = vmatmul.mubr.msk.f32.gmra.mrb[18].mxu1 %vm439_vm2, %v6485_v2  ;;  %4496 = vmatmul.mubr.msk.f32.gmra.mrb[18].mxu0 %vm439_vm2, %v5574_v56 }
 0x11f   : > { %4298 = vmatprep.mubr.msk.f32.mxu1 %vm439_vm2, %v6486_v48  ;;  %4498 = vmatprep.mubr.msk.f32.mxu0 %vm439_vm2, %v5578_v14  ;;  %v6115_v48 = vld [vmem:[%s6332_s2] ss:$0 sm:$0xff] }
 0x122   : > { %4299 = vmatmul.mubr.msk.f32.gmra.mrb[20].mxu1 %vm439_vm2, %v6487_v34  ;;  %4499 = vmatmul.mubr.msk.f32.gmra.mrb[20].mxu0 %vm439_vm2, %v6473_v4 }
 0x123   : > { %4301 = vmatprep.mubr.msk.f32.mxu1 %vm439_vm2, %v6488_v60  ;;  %4501 = vmatprep.mubr.msk.f32.mxu0 %vm439_vm2, %v6475_v49 }
 0x126   : > { %4302 = vmatmul.mubr.msk.f32.gmra.mrb[22].mxu1 %vm439_vm2, %v6489_v1  ;;  %4502 = vmatmul.mubr.msk.f32.gmra.mrb[22].mxu0 %vm439_vm2, %v6498_v6 }
 0x127   : > { %4304 = vmatprep.mubr.msk.f32.mxu1 %vm439_vm2, %v6499_v58  ;;  %4504 = vmatprep.mubr.msk.f32.mxu0 %vm439_vm2, %v6500_v59 }
 0x12a   : > { %4305 = vmatmul.mubr.msk.f32.gmra.mrb[24].mxu1 %vm439_vm2, %v6501_v3  ;;  %4505 = vmatmul.mubr.msk.f32.gmra.mrb[24].mxu0 %vm439_vm2, %v6502_v7 }
 0x12b   : > { %4307 = vmatprep.mubr.msk.f32.mxu1 %vm439_vm2, %v6503_v8  ;;  %4507 = vmatprep.mubr.msk.f32.mxu0 %vm439_vm2, %v6504_v22 }
 0x12e   : > { %4308 = vmatmul.mubr.msk.f32.gmra.mrb[26].mxu1 %vm439_vm2, %v6493_v33  ;;  %4508 = vmatmul.mubr.msk.f32.gmra.mrb[26].mxu0 %vm439_vm2, %v6505_v53 }
 0x12f   : > { %4310 = vmatprep.mubr.msk.f32.mxu1 %vm439_vm2, %v6494_v32  ;;  %4510 = vmatprep.mubr.msk.f32.mxu0 %vm439_vm2, %v6506_v55 }
 0x132   : > { %4311 = vmatmul.mubr.msk.f32.gmra.mrb[28].mxu1 %vm439_vm2, %v6495_v43  ;;  %4511 = vmatmul.mubr.msk.f32.gmra.mrb[28].mxu0 %vm439_vm2, %v6507_v10 }
 0x133   : > { %4313 = vmatprep.mubr.msk.f32.mxu1 %vm439_vm2, %v5940_v15  ;;  %4513 = vmatprep.mubr.msk.f32.mxu0 %vm439_vm2, %v2785_v24 }
 0x136   : > { %4314 = vmatmul.mubr.msk.f32.gmra.mrb[30].mxu1 %vm439_vm2, %v5954_v50  ;;  %4514 = vmatmul.mubr.msk.f32.gmra.mrb[30].mxu0 %vm439_vm2, %v2787_v12 }
 0x1ad   : > { %v4220_v40 = vpop.f32.mrb[0].mxu1 }
 0x1ae   : > { %v1509_v20 = vpop.f32.mrb[1].mxu1 }
 0x1b1   : > { %v4223_v54 = vpop.f32.mrb[2].mxu1 }
 0x1b2   : > { %v1519_v19 = vpop.f32.mrb[3].mxu1 }
 0x1b5   : > { %v4226_v13 = vpop.f32.mrb[4].mxu1 }
 0x1b6   : > { %v1529_v39 = vpop.f32.mrb[5].mxu1 }
 0x1b9   : > { %v4229_v41 = vpop.f32.mrb[6].mxu1 }
 0x1ba   : > { %v1539_v17 = vpop.f32.mrb[7].mxu1 }
 0x1bd   : > { %v4232_v61 = vpop.f32.mrb[8].mxu1 }
 0x1be   : > { %v1549_v45 = vpop.f32.mrb[9].mxu1 }
 0x1c1   : > { %v6100_v0 = vpop.f32.mrb[10].mxu1 }
 0x1c2   : > { %v6102_v16 = vpop.f32.mrb[11].mxu1 }
 0x1c5   : > { %v6104_v49 = vpop.f32.mrb[12].mxu1 }
 0x1c6   : > { %v6106_v56 = vpop.f32.mrb[13].mxu1 }
 0x1c9   : > { %v6108_v14 = vpop.f32.mrb[14].mxu1 }
 0x1ca   : > { %v6110_v36 = vpop.f32.mrb[15].mxu1 }
 0x1cd   : > { %v4470_v33 = vpop.f32.mrb[0].mxu0 }
 0x1ce   : > { %v4518_v5 = vadd.f32 %v4470_v33, %v4220_v40  ;;  %v2863_v11 = vpop.f32.mrb[1].mxu0 }
 0x1cf   : > { %v4519_v47 = vadd.f32 %v2863_v11, %v1509_v20 }
 0x1d0   : > { %v6118_v63 = vadd.f32 %v4518_v5, %v6115_v48 }
 0x1d1   : > { %v6121_v23 = vadd.f32 %v4519_v47, %v6115_v48  ;;  %v4473_v57 = vpop.f32.mrb[2].mxu0 }
 0x1d2   : > { %v3094_v30 = vsub.f32 0.0, %v6118_v63  ;;  %v4520_v38 = vadd.f32 %v4473_v57, %v4223_v54  ;;  %v2873_v37 = vpop.f32.mrb[3].mxu0 }
 0x1d3   : > { %v3093_v62 = vsub.f32 0.0, %v6121_v23  ;;  %v4521_v4 = vadd.f32 %v2873_v37, %v1519_v19 }
 0x1d4   : > { %v3127_v35 = vmul.f32 1.442695, %v3094_v30  ;;  %v6126_v44 = vadd.f32 %v4520_v38, %v6115_v48 }
 0x1d5   : > { %v3125_v27 = vmul.f32 1.442695, %v3093_v62  ;;  %v6129_v2 = vadd.f32 %v4521_v4, %v6115_v48  ;;  %v4476_v34 = vpop.f32.mrb[4].mxu0 }
 0x1d6   : > { %4799 = vpow2.f32 %v3127_v35  ;;  %v3096_v60 = vsub.f32 0.0, %v6126_v44  ;;  %v4522_v1 = vadd.f32 %v4476_v34, %v4226_v13  ;;  %v2883_v15 = vpop.f32.mrb[5].mxu0 }
 0x1d7   : > { %4801 = vpow2.f32 %v3125_v27  ;;  %v3095_v18 = vsub.f32 0.0, %v6129_v2  ;;  %v4523_v25 = vadd.f32 %v2883_v15, %v1529_v39 }
 0x1d8   : > { %v3131_v31 = vmul.f32 1.442695, %v3096_v60  ;;  %v6134_v32 = vadd.f32 %v4522_v1, %v6115_v48 }
 0x1d9   : > { %v3129_v42 = vmul.f32 1.442695, %v3095_v18  ;;  %v6137_v43 = vadd.f32 %v4523_v25, %v6115_v48  ;;  %v4479_v50 = vpop.f32.mrb[6].mxu0 }
 0x1da   : > { %4803 = vpow2.f32 %v3131_v31  ;;  %v3098_v52 = vsub.f32 0.0, %v6134_v32  ;;  %v4524_v26 = vadd.f32 %v4479_v50, %v4229_v41  ;;  %v2893_v51 = vpop.f32.mrb[7].mxu0 }
 0x1db   : > { %4805 = vpow2.f32 %v3129_v42  ;;  %v3097_v46 = vsub.f32 0.0, %v6137_v43  ;;  %v4525_v9 = vadd.f32 %v2893_v51, %v1539_v17 }
 0x1dc   : > { %v3135_v6 = vmul.f32 1.442695, %v3098_v52  ;;  %v6142_v58 = vadd.f32 %v4524_v26, %v6115_v48 }
 0x1dd   : > { %v3133_v59 = vmul.f32 1.442695, %v3097_v46  ;;  %v6145_v3 = vadd.f32 %v4525_v9, %v6115_v48  ;;  %v4482_v7 = vpop.f32.mrb[8].mxu0 }
 0x1de   : > { %4807 = vpow2.f32 %v3135_v6  ;;  %v3100_v8 = vsub.f32 0.0, %v6142_v58  ;;  %v4526_v22 = vadd.f32 %v4482_v7, %v4232_v61  ;;  %v2903_v28 = vpop.f32.mrb[9].mxu0 }
 0x1df   : > { %4809 = vpow2.f32 %v3133_v59  ;;  %v3099_v29 = vsub.f32 0.0, %v6145_v3  ;;  %v4527_v53 = vadd.f32 %v2903_v28, %v1549_v45 }
 0x1e0   : > { %v4800_v55 = vpop.eup %4799  ;;  %v3139_v21 = vmul.f32 1.442695, %v3100_v8  ;;  %v6150_v24 = vadd.f32 %v4526_v22, %v6115_v48 }
 0x1e1   : > { %v4802_v10 = vpop.eup %4801  ;;  %v3190_v12 = vadd.f32 1.0, %v4800_v55  ;;  %v3137_v40 = vmul.f32 1.442695, %v3099_v29  ;;  %v6153_v20 = vadd.f32 %v4527_v53, %v6115_v48  ;;  %v4485_v54 = vpop.f32.mrb[10].mxu0 }
 0x1e2   : > { %v3189_v19 = vadd.f32 1.0, %v4802_v10  ;;  %4811 = vpow2.f32 %v3139_v21  ;;  %v3102_v13 = vsub.f32 0.0, %v6150_v24  ;;  %v4528_v39 = vadd.f32 %v4485_v54, %v6100_v0  ;;  %v2913_v41 = vpop.f32.mrb[11].mxu0 }
 0x1e3   : > { %4813 = vrcp.f32 %v3190_v12  ;;  %v3101_v17 = vsub.f32 0.0, %v6153_v20  ;;  %v4529_v61 = vadd.f32 %v2913_v41, %v6102_v16 }
 0x1e4   : > { %v4804_v45 = vpop.eup %4803  ;;  %4815 = vrcp.f32 %v3189_v19  ;;  %v3143_v33 = vmul.f32 1.442695, %v3102_v13  ;;  %v6160_v5 = vadd.f32 %v4528_v39, %v6115_v48 }
 0x1e5   : > { %v4806_v11 = vpop.eup %4805  ;;  %v3192_v47 = vadd.f32 1.0, %v4804_v45  ;;  %4817 = vpow2.f32 %v3137_v40  ;;  %v3141_v57 = vmul.f32 1.442695, %v3101_v17  ;;  %v6163_v30 = vadd.f32 %v4529_v61, %v6115_v48  ;;  %v4488_v0 = vpop.f32.mrb[12].mxu0 }
 0x1e6   : > { %v3191_v38 = vadd.f32 1.0, %v4806_v11  ;;  %4819 = vpow2.f32 %v3143_v33  ;;  %v3104_v37 = vsub.f32 0.0, %v6160_v5  ;;  %v4530_v16 = vadd.f32 %v4488_v0, %v6104_v49  ;;  %v2923_v62 = vpop.f32.mrb[13].mxu0 }
 0x1e7   : > { %4821 = vrcp.f32 %v3192_v47  ;;  %v3103_v4 = vsub.f32 0.0, %v6163_v30  ;;  %v4531_v35 = vadd.f32 %v2923_v62, %v6106_v56 }
 0x1e8   : > { %v4808_v27 = vpop.eup %4807  ;;  %4823 = vrcp.f32 %v3191_v38  ;;  %v3147_v34 = vmul.f32 1.442695, %v3104_v37  ;;  %v6170_v60 = vadd.f32 %v4530_v16, %v6115_v48 }
 0x1e9   : > { %v4810_v1 = vpop.eup %4809  ;;  %v3194_v15 = vadd.f32 1.0, %v4808_v27  ;;  %4825 = vpow2.f32 %v3141_v57  ;;  %v3145_v18 = vmul.f32 1.442695, %v3103_v4  ;;  %v6173_v25 = vadd.f32 %v4531_v35, %v6115_v48  ;;  %v4491_v49 = vpop.f32.mrb[14].mxu0 }
 0x1ea   : > { %v3193_v31 = vadd.f32 1.0, %v4810_v1  ;;  %4827 = vpow2.f32 %v3147_v34  ;;  %v3106_v42 = vsub.f32 0.0, %v6170_v60  ;;  %v4532_v56 = vadd.f32 %v4491_v49, %v6108_v14  ;;  %v2933_v50 = vpop.f32.mrb[15].mxu0 }
 0x1eb   : > { %4829 = vrcp.f32 %v3194_v15  ;;  %v3105_v52 = vsub.f32 0.0, %v6173_v25  ;;  %v4533_v26 = vadd.f32 %v2933_v50, %v6110_v36 }
 0x1ec   : > { %v4812_v51 = vpop.eup %4811  ;;  %4831 = vrcp.f32 %v3193_v31  ;;  %v3151_v46 = vmul.f32 1.442695, %v3106_v42  ;;  %v6181_v9 = vadd.f32 %v4532_v56, %v6115_v48 }
 0x1ed   : > { %v4294_v6 = vpop.f32.mrb[16].mxu1  ;;  %v4814_v59 = vpop.eup %4813  ;;  %v3196_v14 = vadd.f32 1.0, %v4812_v51  ;;  %4833 = vpow2.f32 %v3145_v18  ;;  %v3149_v7 = vmul.f32 1.442695, %v3105_v52  ;;  %v6189_v8 = vadd.f32 %v4533_v26, %v6115_v48 }
 0x1ee   : > { %v4494_v36 = vpop.f32.mrb[16].mxu0  ;;  %v1861_v22 = vpop.f32.mrb[17].mxu1  ;;  %v3254_v29 = vmul.f32 %v4814_v59, %v6118_v63  ;;  %4835 = vpow2.f32 %v3151_v46  ;;  %v3108_v53 = vsub.f32 0.0, %v6181_v9 }
 0x1ef   : > { %v4816_v28 = vpop.eup %4815  ;;  %v4534_v55 = vadd.f32 %v4494_v36, %v4294_v6  ;;  %v2943_v21 = vpop.f32.mrb[17].mxu0  ;;  %4837 = vrcp.f32 %v3196_v14  ;;  %v3107_v40 = vsub.f32 0.0, %v6189_v8 }
 0x1f0   : > { %v4818_v10 = vpop.eup %4817  ;;  %v3253_v12 = vmul.f32 %v4816_v28, %v6121_v23  ;;  %v4535_v54 = vadd.f32 %v2943_v21, %v1861_v22  ;;  %3286 = vst [vmem:[%s6186_s19 + $0x8] sm:$0xff] %v3254_v29  ;;  %4839 = vpow2.f32 %v3149_v7  ;;  %v3155_v39 = vmul.f32 1.442695, %v3108_v53 }
 0x1f1   : > { %v4820_v19 = vpop.eup %4819  ;;  %v3195_v13 = vadd.f32 1.0, %v4818_v10  ;;  %v6197_v63 = vadd.f32 %v4534_v55, %v6115_v48  ;;  %v4297_v41 = vpop.f32.mrb[18].mxu1  ;;  %v3153_v45 = vmul.f32 1.442695, %v3107_v40 }
 0x1f2   : > { %v4822_v17 = vpop.eup %4821  ;;  %3285 = vst [vmem:[%s6186_s19] sm:$0xff] %v3253_v12  ;;  %v3198_v61 = vadd.f32 1.0, %v4820_v19  ;;  %v6201_v23 = vadd.f32 %v4535_v54, %v6115_v48  ;;  %v4497_v33 = vpop.f32.mrb[18].mxu0 }
 0x1f3   : > { %v1871_v11 = vpop.f32.mrb[19].mxu1  ;;  %v4824_v47 = vpop.eup %4823  ;;  %v3256_v57 = vmul.f32 %v4822_v17, %v6126_v44  ;;  %4841 = vrcp.f32 %v3195_v13  ;;  %v3110_v0 = vsub.f32 0.0, %v6197_v63  ;;  %v4536_v38 = vadd.f32 %v4497_v33, %v4297_v41 }
 0x1f4   : > { %v2953_v37 = vpop.f32.mrb[19].mxu0  ;;  %v4826_v16 = vpop.eup %4825  ;;  %v3255_v62 = vmul.f32 %v4824_v47, %v6129_v2  ;;  %4843 = vrcp.f32 %v3198_v61  ;;  %v3109_v4 = vsub.f32 0.0, %v6201_v23 }
 0x1f5   : > { %v4537_v35 = vadd.f32 %v2953_v37, %v1871_v11  ;;  %v4828_v27 = vpop.eup %4827  ;;  %3288 = vst [vmem:[%s6186_s19 + $0x18] sm:$0xff] %v3256_v57  ;;  %v3197_v34 = vadd.f32 1.0, %v4826_v16  ;;  %4845 = vpow2.f32 %v3155_v39  ;;  %v3159_v1 = vmul.f32 1.442695, %v3110_v0  ;;  %v4300_v15 = vpop.f32.mrb[20].mxu1 }
 0x1f6   : > { %v6209_v44 = vadd.f32 %v4536_v38, %v6115_v48  ;;  %v4830_v18 = vpop.eup %4829  ;;  %3287 = vst [vmem:[%s6186_s19 + $0x10] sm:$0xff] %v3255_v62  ;;  %v3200_v49 = vadd.f32 1.0, %v4828_v27  ;;  %4847 = vpow2.f32 %v3153_v45  ;;  %v3157_v31 = vmul.f32 1.442695, %v3109_v4  ;;  %v4500_v42 = vpop.f32.mrb[20].mxu0 }
 0x1f7   : > { %v6213_v2 = vadd.f32 %v4537_v35, %v6115_v48  ;;  %v1881_v56 = vpop.f32.mrb[21].mxu1  ;;  %v4832_v50 = vpop.eup %4831  ;;  %v3258_v52 = vmul.f32 %v4830_v18, %v6134_v32  ;;  %4849 = vrcp.f32 %v3197_v34  ;;  %v4538_v51 = vadd.f32 %v4500_v42, %v4300_v15 }
 0x1f8   : > { %v3112_v26 = vsub.f32 0.0, %v6209_v44  ;;  %v2963_v46 = vpop.f32.mrb[21].mxu0  ;;  %v4834_v6 = vpop.eup %4833  ;;  %v3257_v59 = vmul.f32 %v4832_v50, %v6137_v43  ;;  %4851 = vrcp.f32 %v3200_v49 }
 0x1f9   : > { %v3111_v14 = vsub.f32 0.0, %v6213_v2  ;;  %v4539_v7 = vadd.f32 %v2963_v46, %v1881_v56  ;;  %v4836_v36 = vpop.eup %4835  ;;  %3290 = vst [vmem:[%s6186_s19 + $0x28] sm:$0xff] %v3258_v52  ;;  %v3199_v22 = vadd.f32 1.0, %v4834_v6  ;;  %4853 = vpow2.f32 %v3159_v1  ;;  %v4303_v29 = vpop.f32.mrb[22].mxu1 }
 0x1fa   : > { %v3163_v28 = vmul.f32 1.442695, %v3112_v26  ;;  %v6221_v32 = vadd.f32 %v4538_v51, %v6115_v48  ;;  %v4838_v53 = vpop.eup %4837  ;;  %3289 = vst [vmem:[%s6186_s19 + $0x20] sm:$0xff] %v3257_v59  ;;  %v3202_v55 = vadd.f32 1.0, %v4836_v36  ;;  %4855 = vpow2.f32 %v3157_v31  ;;  %v4503_v10 = vpop.f32.mrb[22].mxu0 }
 0x1fb   : > { %v3161_v21 = vmul.f32 1.442695, %v3111_v14  ;;  %v6225_v43 = vadd.f32 %v4539_v7, %v6115_v48  ;;  %v1891_v12 = vpop.f32.mrb[23].mxu1  ;;  %v4840_v40 = vpop.eup %4839  ;;  %v3260_v54 = vmul.f32 %v4838_v53, %v6142_v58  ;;  %4857 = vrcp.f32 %v3199_v22 }
 0x1fc   : > { %v3114_v19 = vsub.f32 0.0, %v6221_v32  ;;  %v4540_v13 = vadd.f32 %v4503_v10, %v4303_v29  ;;  %v2973_v39 = vpop.f32.mrb[23].mxu0  ;;  %4859 = vrcp.f32 %v3202_v55  ;;  %v3201_v41 = vadd.f32 1.0, %v4840_v40 }
 0x1fd   : > { %v3113_v17 = vsub.f32 0.0, %v6225_v43  ;;  %v4541_v61 = vadd.f32 %v2973_v39, %v1891_v12  ;;  %v4842_v45 = vpop.eup %4841  ;;  %3292 = vst [vmem:[%s6186_s19 + $0x38] sm:$0xff] %v3260_v54  ;;  %4861 = vpow2.f32 %v3163_v28  ;;  %v4306_v47 = vpop.f32.mrb[24].mxu1 }
 0x1fe   : > { %v3167_v33 = vmul.f32 1.442695, %v3114_v19  ;;  %v6232_v11 = vadd.f32 %v4540_v13, %v6115_v48  ;;  %v4844_v58 = vpop.eup %4843  ;;  %v3259_v57 = vmul.f32 %v4842_v45, %v6145_v3  ;;  %4863 = vrcp.f32 %v3201_v41  ;;  %v4506_v37 = vpop.f32.mrb[24].mxu0 }
 0x1ff   : > { %v3165_v0 = vmul.f32 1.442695, %v3113_v17  ;;  %v6236_v38 = vadd.f32 %v4541_v61, %v6115_v48  ;;  %v1901_v16 = vpop.f32.mrb[25].mxu1  ;;  %v4846_v62 = vpop.eup %4845  ;;  %v3262_v4 = vmul.f32 %v4844_v58, %v6150_v24  ;;  %4865 = vpow2.f32 %v3161_v21 }
 0x200   : > { %v3116_v35 = vsub.f32 0.0, %v6232_v11  ;;  %v4542_v27 = vadd.f32 %v4506_v37, %v4306_v47  ;;  %v2983_v34 = vpop.f32.mrb[25].mxu0  ;;  %v4848_v1 = vpop.eup %4847  ;;  %3291 = vst [vmem:[%s6186_s19 + $0x30] sm:$0xff] %v3259_v57  ;;  %v3204_v15 = vadd.f32 1.0, %v4846_v62  ;;  %4867 = vpow2.f32 %v3167_v33 }
 0x201   : > { %v3115_v3 = vsub.f32 0.0, %v6236_v38  ;;  %v4543_v18 = vadd.f32 %v2983_v34, %v1901_v16  ;;  %v4850_v49 = vpop.eup %4849  ;;  %3294 = vst [vmem:[%s6186_s19 + $0x48] sm:$0xff] %v3262_v4  ;;  %v3203_v31 = vadd.f32 1.0, %v4848_v1  ;;  %4869 = vpow2.f32 %v3165_v0  ;;  %v4309_v24 = vpop.f32.mrb[26].mxu1 }
 0x202   : > { %v3171_v42 = vmul.f32 1.442695, %v3116_v35  ;;  %v6244_v56 = vadd.f32 %v4542_v27, %v6115_v48  ;;  %v4852_v50 = vpop.eup %4851  ;;  %v3261_v52 = vmul.f32 %v4850_v49, %v6153_v20  ;;  %4871 = vrcp.f32 %v3204_v15  ;;  %v4509_v46 = vpop.f32.mrb[26].mxu0 }
 0x203   : > { %v3169_v26 = vmul.f32 1.442695, %v3115_v3  ;;  %v6248_v51 = vadd.f32 %v4543_v18, %v6115_v48  ;;  %v1911_v6 = vpop.f32.mrb[27].mxu1  ;;  %v4854_v59 = vpop.eup %4853  ;;  %v3264_v14 = vmul.f32 %v4852_v50, %v6160_v5  ;;  %4873 = vrcp.f32 %v3203_v31 }
 0x204   : > { %v3118_v7 = vsub.f32 0.0, %v6244_v56  ;;  %v4544_v36 = vadd.f32 %v4509_v46, %v4309_v24  ;;  %v2993_v22 = vpop.f32.mrb[27].mxu0  ;;  %v4856_v28 = vpop.eup %4855  ;;  %3293 = vst [vmem:[%s6186_s19 + $0x40] sm:$0xff] %v3261_v52  ;;  %v3206_v29 = vadd.f32 1.0, %v4854_v59  ;;  %4875 = vpow2.f32 %v3171_v42 }
 0x205   : > { %v3117_v20 = vsub.f32 0.0, %v6248_v51  ;;  %v4545_v53 = vadd.f32 %v2993_v22, %v1911_v6  ;;  %v4858_v55 = vpop.eup %4857  ;;  %3296 = vst [vmem:[%s6186_s19 + $0x58] sm:$0xff] %v3264_v14  ;;  %v3205_v21 = vadd.f32 1.0, %v4856_v28  ;;  %4877 = vpow2.f32 %v3169_v26  ;;  %v4312_v5 = vpop.f32.mrb[28].mxu1 }
 0x206   : > { %v3175_v10 = vmul.f32 1.442695, %v3118_v7  ;;  %v6256_v12 = vadd.f32 %v4544_v36, %v6115_v48  ;;  %v4860_v40 = vpop.eup %4859  ;;  %v3263_v54 = vmul.f32 %v4858_v55, %v6163_v30  ;;  %4879 = vrcp.f32 %v3206_v29  ;;  %v4512_v39 = vpop.f32.mrb[28].mxu0 }
 0x207   : > { %v3173_v19 = vmul.f32 1.442695, %v3117_v20  ;;  %v6260_v13 = vadd.f32 %v4545_v53, %v6115_v48  ;;  %v1921_v41 = vpop.f32.mrb[29].mxu1  ;;  %v4862_v17 = vpop.eup %4861  ;;  %v3266_v61 = vmul.f32 %v4860_v40, %v6170_v60  ;;  %4881 = vrcp.f32 %v3205_v21 }
 0x208   : > { %v3120_v45 = vsub.f32 0.0, %v6256_v12  ;;  %v4546_v33 = vadd.f32 %v4512_v39, %v4312_v5  ;;  %v3003_v47 = vpop.f32.mrb[29].mxu0  ;;  %v4864_v58 = vpop.eup %4863  ;;  %3295 = vst [vmem:[%s6186_s19 + $0x50] sm:$0xff] %v3263_v54  ;;  %v3208_v57 = vadd.f32 1.0, %v4862_v17  ;;  %4883 = vpow2.f32 %v3175_v10 }
 0x209   : > { %v3119_v30 = vsub.f32 0.0, %v6260_v13  ;;  %v4547_v0 = vadd.f32 %v3003_v47, %v1921_v41  ;;  %v4866_v37 = vpop.eup %4865  ;;  %3298 = vst [vmem:[%s6186_s19 + $0x68] sm:$0xff] %v3266_v61  ;;  %v3265_v16 = vmul.f32 %v4864_v58, %v6173_v25  ;;  %4885 = vpow2.f32 %v3173_v19  ;;  %v4315_v4 = vpop.f32.mrb[30].mxu1 }
 0x20a   : > { %v3179_v62 = vmul.f32 1.442695, %v3120_v45  ;;  %v6269_v60 = vadd.f32 %v4546_v33, %v6115_v48  ;;  %v4868_v35 = vpop.eup %4867  ;;  %4887 = vrcp.f32 %v3208_v57  ;;  %v3207_v27 = vadd.f32 1.0, %v4866_v37  ;;  %v4515_v15 = vpop.f32.mrb[30].mxu0 }
 0x20b   : > { %v3177_v34 = vmul.f32 1.442695, %v3119_v30  ;;  %v6272_v1 = vadd.f32 %v4547_v0, %v6115_v48  ;;  %v1931_v3 = vpop.f32.mrb[31].mxu1  ;;  %v4870_v18 = vpop.eup %4869  ;;  %3297 = vst [vmem:[%s6186_s19 + $0x60] sm:$0xff] %v3265_v16  ;;  %v3210_v49 = vadd.f32 1.0, %v4868_v35  ;;  %v4548_v31 = vadd.f32 %v4515_v15, %v4315_v4 }
 0x20c   : > { %4889 = vpow2.f32 %v3179_v62  ;;  %v3122_v25 = vsub.f32 0.0, %v6269_v60  ;;  %v3013_v42 = vpop.f32.mrb[31].mxu0  ;;  %v4872_v24 = vpop.eup %4871  ;;  %v3209_v50 = vadd.f32 1.0, %v4870_v18 }
 0x20d   : > { %4891 = vrcp.f32 %v3207_v27  ;;  %v3121_v52 = vsub.f32 0.0, %v6272_v1  ;;  %v4549_v26 = vadd.f32 %v3013_v42, %v1931_v3  ;;  %v4874_v46 = vpop.eup %4873  ;;  %v3268_v6 = vmul.f32 %v4872_v24, %v6181_v9 }
 0x20e   : > { %4893 = vrcp.f32 %v3210_v49  ;;  %v3183_v59 = vmul.f32 1.442695, %v3122_v25  ;;  %v6279_v14 = vadd.f32 %v4548_v31, %v6115_v48  ;;  %v4876_v7 = vpop.eup %4875  ;;  %v3267_v36 = vmul.f32 %v4874_v46, %v6189_v8 }
 0x20f   : > { %4895 = vrcp.f32 %v3209_v50  ;;  %v6283_v22 = vadd.f32 %v4549_v26, %v6115_v48  ;;  %v4878_v28 = vpop.eup %4877  ;;  %3300 = vst [vmem:[%s6186_s19 + $0x78] sm:$0xff] %v3268_v6  ;;  %v3212_v29 = vadd.f32 1.0, %v4876_v7  ;;  %v3181_v20 = vmul.f32 1.442695, %v3121_v52 }
 0x210   : > { %4897 = vpow2.f32 %v3177_v34  ;;  %v3124_v9 = vsub.f32 0.0, %v6279_v14  ;;  %v4880_v53 = vpop.eup %4879  ;;  %3299 = vst [vmem:[%s6186_s19 + $0x70] sm:$0xff] %v3267_v36  ;;  %v3211_v55 = vadd.f32 1.0, %v4878_v28 }
 0x211   : > { %4899 = vpow2.f32 %v3183_v59  ;;  %v3123_v21 = vsub.f32 0.0, %v6283_v22  ;;  %v4882_v8 = vpop.eup %4881  ;;  %v3270_v10 = vmul.f32 %v4880_v53, %v6197_v63 }
 0x212   : > { %4901 = vrcp.f32 %v3212_v29  ;;  %v3187_v48 = vmul.f32 1.442695, %v3124_v9  ;;  %v4884_v5 = vpop.eup %4883  ;;  %v3269_v40 = vmul.f32 %v4882_v8, %v6201_v23 }
 0x213   : > { %4903 = vrcp.f32 %v3211_v55  ;;  %v4886_v54 = vpop.eup %4885  ;;  %3302 = vst [vmem:[%s6186_s19 + $0x88] sm:$0xff] %v3270_v10  ;;  %v3214_v19 = vadd.f32 1.0, %v4884_v5  ;;  %v3185_v39 = vmul.f32 1.442695, %v3123_v21 }
 0x214   : > { %4905 = vpow2.f32 %v3181_v20  ;;  %v4888_v41 = vpop.eup %4887  ;;  %3301 = vst [vmem:[%s6186_s19 + $0x80] sm:$0xff] %v3269_v40  ;;  %v3213_v17 = vadd.f32 1.0, %v4886_v54 }
 0x215   : > { %4907 = vpow2.f32 %v3187_v48  ;;  %v3272_v63 = vmul.f32 %v4888_v41, %v6209_v44 }
 0x216   : > { %v4890_v61 = vpop.eup %4889  ;;  %4909 = vrcp.f32 %v3214_v19 }
 0x217   : > { %v4892_v45 = vpop.eup %4891  ;;  %4911 = vrcp.f32 %v3213_v17  ;;  %v3216_v23 = vadd.f32 1.0, %v4890_v61  ;;  %3304 = vst [vmem:[%s6186_s19 + $0x98] sm:$0xff] %v3272_v63 }
 0x218   : > { %v4894_v33 = vpop.eup %4893  ;;  %v3271_v47 = vmul.f32 %v4892_v45, %v6213_v2  ;;  %4913 = vpow2.f32 %v3185_v39 }
 0x219   : > { %v4896_v58 = vpop.eup %4895  ;;  %v3274_v57 = vmul.f32 %v4894_v33, %v6221_v32  ;;  %4915 = vrcp.f32 %v3216_v23 }
 0x21a   : > { %v4898_v30 = vpop.eup %4897  ;;  %3303 = vst [vmem:[%s6186_s19 + $0x90] sm:$0xff] %v3271_v47  ;;  %v3273_v44 = vmul.f32 %v4896_v58, %v6225_v43 }
 0x21b   : > { %v4900_v0 = vpop.eup %4899  ;;  %3306 = vst [vmem:[%s6186_s19 + $0xa8] sm:$0xff] %v3274_v57  ;;  %v3215_v37 = vadd.f32 1.0, %v4898_v30 }
 0x21c   : > { %v4902_v16 = vpop.eup %4901  ;;  %3305 = vst [vmem:[%s6186_s19 + $0xa0] sm:$0xff] %v3273_v44  ;;  %v3218_v62 = vadd.f32 1.0, %v4900_v0 }
 0x21d   : > { %v4904_v4 = vpop.eup %4903  ;;  %v3276_v2 = vmul.f32 %v4902_v16, %v6232_v11  ;;  %4917 = vrcp.f32 %v3215_v37 }
 0x21e   : > { %v4906_v35 = vpop.eup %4905  ;;  %v3275_v32 = vmul.f32 %v4904_v4, %v6236_v38  ;;  %4919 = vrcp.f32 %v3218_v62 }
 0x21f   : > { %v4908_v27 = vpop.eup %4907  ;;  %3308 = vst [vmem:[%s6186_s19 + $0xb8] sm:$0xff] %v3276_v2  ;;  %v3217_v43 = vadd.f32 1.0, %v4906_v35 }
 0x220   : > { %v4910_v34 = vpop.eup %4909  ;;  %3307 = vst [vmem:[%s6186_s19 + $0xb0] sm:$0xff] %v3275_v32  ;;  %v3220_v15 = vadd.f32 1.0, %v4908_v27 }
 0x221   : > { %v4912_v3 = vpop.eup %4911  ;;  %v3278_v18 = vmul.f32 %v4910_v34, %v6244_v56  ;;  %4921 = vrcp.f32 %v3217_v43 }
 0x222   : > { %v4914_v11 = vpop.eup %4913  ;;  %v3277_v49 = vmul.f32 %v4912_v3, %v6248_v51  ;;  %4923 = vrcp.f32 %v3220_v15 }
 0x223   : > { %v4916_v38 = vpop.eup %4915  ;;  %3310 = vst [vmem:[%s6186_s19 + $0xc8] sm:$0xff] %v3278_v18  ;;  %v3219_v25 = vadd.f32 1.0, %v4914_v11 }
 0x224   : > { %3309 = vst [vmem:[%s6186_s19 + $0xc0] sm:$0xff] %v3277_v49  ;;  %v3280_v31 = vmul.f32 %v4916_v38, %v6256_v12 }
 0x225   : > { %4925 = vrcp.f32 %v3219_v25 }
 0x226   : > { %3312 = vst [vmem:[%s6186_s19 + $0xd8] sm:$0xff] %v3280_v31 }
 0x227   : > { %v4918_v42 = vpop.eup %4917 }
 0x228   : > { %v4920_v56 = vpop.eup %4919  ;;  %v3279_v24 = vmul.f32 %v4918_v42, %v6260_v13 }
 0x229   : > { %v3282_v50 = vmul.f32 %v4920_v56, %v6269_v60 }
 0x22a   : > { %3311 = vst [vmem:[%s6186_s19 + $0xd0] sm:$0xff] %v3279_v24 }
 0x22b   : > { %v4922_v51 = vpop.eup %4921  ;;  %3314 = vst [vmem:[%s6186_s19 + $0xe8] sm:$0xff] %v3282_v50 }
 0x22c   : > { %v4924_v52 = vpop.eup %4923  ;;  %v3281_v26 = vmul.f32 %v4922_v51, %v6272_v1 }
 0x22d   : > { %v3284_v46 = vmul.f32 %v4924_v52, %v6279_v14 }
 0x22e   : > { %3313 = vst [vmem:[%s6186_s19 + $0xe0] sm:$0xff] %v3281_v26 }
 0x22f   : > { %v4926_v6 = vpop.eup %4925  ;;  %3316 = vst [vmem:[%s6186_s19 + $0xf8] sm:$0xff] %v3284_v46 }
 0x230   : > { %v3283_v12 = vmul.f32 %v4926_v6, %v6283_v22 }
 0x232   : > { %3315 = vst [vmem:[%s6186_s19 + $0xf0] sm:$0xff] %v3283_v12 }
 0x233 PF: > { %s13_s14 = sadd.s32 1, %s4949_s14   ;;  %s6508_s12 = smov %s4945_s13 }
 0x234   : > { %p10_p5 = scmp.ge.s32.totalorder %s13_s14, 4   ;;  %s6509_s13 = smov %s6511_s15 }
 0x236   :  { %12 = sbr.rel (!%p10_p5) target bundleno = 2 (0x2), region = 76 }

</bundles_post_ra>
